<compile_context>
chip_gen: v7x
topology: tpu7x:2x2x1
jax: 0.10.0
libtpu: 0.0.40
codegen_flags: <defaults>
</compile_context>

<pallas_src>
import functools

import jax
import jax.numpy as jnp
from jax.experimental import pallas as pl
from jax.experimental.pallas import tpu as pltpu


def _spatial_attention_kernel(
    x_ref,      # (TB, TCc, HW)        lane-dense input channel tile
    w_ref,      # (2*K*K,)             conv weights in SMEM
    cmask_ref,  # (K, 1, HW)           column-validity mask per kx tap (f32 0/1)
    out_ref,    # (TB, 1, HW)          lane-dense output block
    sum_ref,    # (TB, HW) f32         running channel sum   (VMEM scratch)
    max_ref,    # (TB, HW) f32         running channel max   (VMEM scratch)
    pad_ref,    # (2, TB, HW + 2*PADF) zero-padded avg/max   (VMEM scratch)
    *,
    C, H, W, K,
):
    P = K // 2
    HW = H * W
    PADF = P * (W + 1)                 # flat halo on each side of the image
    TB = x_ref.shape[0]

    c_step = pl.program_id(1)
    n_c = pl.num_programs(1)

    # ---- channel reduction: single pass over this channel tile, lane-dense ----
    xf = x_ref[...].astype(jnp.float32)                   # (TB, TCc, HW)
    part_sum = jnp.sum(xf, axis=1)                        # (TB, HW)
    part_max = jnp.max(xf, axis=1)                        # (TB, HW)

    @pl.when(c_step == 0)
    def _init():
        sum_ref[...] = part_sum
        max_ref[...] = part_max

    @pl.when(c_step > 0)
    def _accumulate():
        sum_ref[...] = sum_ref[...] + part_sum
        max_ref[...] = jnp.maximum(max_ref[...], part_max)

    # ---- KxK conv + sigmoid once the full channel reduction is available ----
    @pl.when(c_step == n_c - 1)
    def _finalize():
        avg = sum_ref[...] / float(C)                     # (TB, HW)
        mx = max_ref[...]

        # Zero only the halo; the interior is fully overwritten every time.
        halo = jnp.zeros((TB, PADF), jnp.float32)
        pad_ref[0, :, 0:PADF] = halo
        pad_ref[1, :, 0:PADF] = halo
        pad_ref[0, :, PADF + HW:PADF + HW + PADF] = halo
        pad_ref[1, :, PADF + HW:PADF + HW + PADF] = halo
        pad_ref[0, :, PADF:PADF + HW] = avg
        pad_ref[1, :, PADF:PADF + HW] = mx

        # Hoist the K column masks (one per kx) out of the tap loops.
        cmasks = [cmask_ref[kx] for kx in range(K)]       # each (1, HW)

        # Per-ky partial accumulators (independent chains) + final tree sum.
        partials = []
        for ky in range(K):
            base = PADF + (ky - P) * W - P                # static, always >= 0
            strip_a = pad_ref[0, :, base:base + HW + 2 * P]   # (TB, HW + 2P)
            strip_m = pad_ref[1, :, base:base + HW + 2 * P]
            part = None
            for kx in range(K):
                w_avg = w_ref[ky * K + kx]                # channel 0 (mean) weight
                w_max = w_ref[K * K + ky * K + kx]        # channel 1 (max) weight
                term = (strip_a[:, kx:kx + HW] * w_avg
                        + strip_m[:, kx:kx + HW] * w_max)
                term = term * cmasks[kx]                  # kill row-boundary wrap
                part = term if part is None else part + term
            partials.append(part)
        while len(partials) > 1:
            nxt = [partials[i] + partials[i + 1]
                   for i in range(0, len(partials) - 1, 2)]
            if len(partials) % 2:
                nxt.append(partials[-1])
            partials = nxt
        acc = partials[0]                                 # (TB, HW)

        out_ref[:, 0, :] = jax.nn.sigmoid(acc).astype(out_ref.dtype)


def _pick_tiles(B, C, HW, bytes_per_elem=4, budget=2 * 1024 * 1024):
    """Pick (TB, TCc): small bounded x block, >= 2 steps on the parallel batch axis."""
    # Channel tile: full C if it fits the budget, else the largest mult-of-8 divisor.
    if C * HW * bytes_per_elem <= budget or C <= 8:
        tc = C
    else:
        tc = C
        for d in range(C, 0, -1):
            if C % d == 0 and d % 8 == 0 and d * HW * bytes_per_elem <= budget:
                tc = d
                break
    # Batch tile: keep >= 2 grid steps (v7x has 2 TensorCores) and modest vregs.
    cap = max(1, B // 2)
    cap = max(1, min(cap, 8, budget // max(1, tc * HW * bytes_per_elem)))
    tb = 1
    for d in range(cap, 0, -1):
        if B % d == 0:
            tb = d
            break
    return tb, tc


def spatial_attention(x, weight):
    """x: (B, C, H, W).  weight: (2, K, K) == Conv2d(2, 1, K, bias=False).weight[0].
    Returns the spatial attention map sigmoid(conv([mean_c, max_c])), shape (B,1,H,W)."""
    B, C, H, W = x.shape
    _, K, _ = weight.shape
    P = K // 2
    HW = H * W
    PADF = P * (W + 1)
    WIDTH = HW + 2 * PADF

    TB, TCc = _pick_tiles(B, C, HW)

    x_flat = x.reshape(B, C, HW)                       # contiguous -> free relabel
    w_flat = weight.reshape(-1).astype(jnp.float32)    # (2*K*K,) scalars -> SMEM

    # Column-validity masks: tap kx only contributes where the shifted column stays
    # inside the image row (left/right zero padding of the conv).
    col = jnp.arange(HW, dtype=jnp.int32) % W
    cmask = jnp.stack(
        [((col + (kx - P) >= 0) & (col + (kx - P) < W)).astype(jnp.float32)
         for kx in range(K)]
    ).reshape(K, 1, HW)

    kernel = functools.partial(_spatial_attention_kernel, C=C, H=H, W=W, K=K)

    out = pl.pallas_call(
        kernel,
        out_shape=jax.ShapeDtypeStruct((B, 1, HW), x.dtype),
        grid_spec=pltpu.PrefetchScalarGridSpec(
            num_scalar_prefetch=0,
            grid=(B // TB, C // TCc),
            in_specs=[
                pl.BlockSpec((TB, TCc, HW), lambda b, c: (b, c, 0)),
                pl.BlockSpec(memory_space=pltpu.MemorySpace.SMEM),
                pl.BlockSpec((K, 1, HW), lambda b, c: (0, 0, 0)),
            ],
            out_specs=pl.BlockSpec((TB, 1, HW), lambda b, c: (b, 0, 0)),
            scratch_shapes=[
                pltpu.VMEM((TB, HW), jnp.float32),          # running sum
                pltpu.VMEM((TB, HW), jnp.float32),          # running max
                pltpu.VMEM((2, TB, WIDTH), jnp.float32),    # padded avg/max
            ],
        ),
        compiler_params=pltpu.CompilerParams(
            dimension_semantics=("parallel", "arbitrary"),
            vmem_limit_bytes=32 * 1024 * 1024,
        ),
        cost_estimate=pl.CostEstimate(
            flops=B * HW * (2 * C + 4 * K * K),
            transcendentals=B * HW,
            bytes_accessed=4 * (B * C * HW + B * HW + 2 * K * K + K * HW),
        ),
    )(x_flat, w_flat, cmask)

    return out.reshape(B, 1, H, W)


def spatial_attention_reference(x, weight):
    """Pure-JAX reference (PyTorch cross-correlation semantics) for validation."""
    avg = jnp.mean(x, axis=1, keepdims=True)
    mx = jnp.max(x, axis=1, keepdims=True)
    s = jnp.concatenate([avg, mx], axis=1)                    # (B, 2, H, W)
    P = weight.shape[-1] // 2
    out = jax.lax.conv_general_dilated(
        s, weight[None], window_strides=(1, 1), padding=[(P, P), (P, P)],
        dimension_numbers=("NCHW", "OIHW", "NCHW"))
    return jax.nn.sigmoid(out)


if __name__ == "__main__":
    key = jax.random.PRNGKey(0)
    kx_key, kw_key = jax.random.split(key)

    B, C, H, W = 2, 4, 16, 16
    kernel_size = 7                                           # module default

    x = jax.random.normal(kx_key, (B, C, H, W), jnp.float32)
    # nn.Conv2d(2, 1, 7, padding=3, bias=False).weight has shape (1, 2, 7, 7);
    # we pass the squeezed (2, 7, 7) tensor.
    weight = 0.1 * jax.random.normal(kw_key, (2, kernel_size, kernel_size), jnp.float32)

    out = jax.block_until_ready(spatial_attention(x, weight))
    ref = jax.block_until_ready(spatial_attention_reference(x, weight))

    assert out.shape == (B, 1, H, W)
    assert jnp.allclose(out, ref, atol=1e-5, rtol=1e-5), "Pallas kernel mismatch vs reference"

    print("KERNEL_OK")
</pallas_src>

<mosaic_0001>
module attributes {stable_mosaic.version = 11 : i64} {
  func.func @_spatial_attention_kernel(%arg0: i32, %arg1: i32, %arg2: memref<1x4x256xf32, #tpu.memory_space<vmem>>, %arg3: memref<98xf32, #tpu.memory_space<smem>>, %arg4: memref<7x1x256xf32, #tpu.memory_space<vmem>>, %arg5: memref<1x1x256xf32, #tpu.memory_space<vmem>>, %arg6: memref<1x256xf32, #tpu.memory_space<vmem>>, %arg7: memref<1x256xf32, #tpu.memory_space<vmem>>, %arg8: memref<2x1x358xf32, #tpu.memory_space<vmem>>) attributes {dimension_semantics = [#tpu.dimension_semantics<parallel>, #tpu.dimension_semantics<arbitrary>], iteration_bounds = array<i64: 2, 1>, scalar_prefetch = 0 : i64, scratch_operands = 3 : i64, tpu.core_type = #tpu.core_type<tc>, window_params = [{transform_indices = @transform_0, window_bounds = array<i64: 1, 4, 256>}, {transform_indices = @transform_1, window_bounds = array<i64: 98>}, {pipeline_mode = #tpu.pipeline_mode<synchronous>, transform_indices = @transform_2, window_bounds = array<i64: 7, 1, 256>}, {transform_indices = @transform_3, window_bounds = array<i64: 1, 1, 256>}]} {
    %c0 = arith.constant 0 : index
    %c0_0 = arith.constant 0 : index
    %c0_1 = arith.constant 0 : index
    %0 = vector.load %arg2[%c0, %c0_0, %c0_1] : memref<1x4x256xf32, #tpu.memory_space<vmem>>, vector<1x4x256xf32>
    %cst = arith.constant dense<0.000000e+00> : vector<1x256xf32>
    %1 = vector.multi_reduction <add>, %0, %cst [1] : vector<1x4x256xf32> to vector<1x256xf32>
    %cst_2 = arith.constant dense<0xFF800000> : vector<1x256xf32>
    %2 = vector.multi_reduction <maximumf>, %0, %cst_2 [1] : vector<1x4x256xf32> to vector<1x256xf32>
    %c0_i32 = arith.constant 0 : i32
    %3 = arith.cmpi eq, %arg1, %c0_i32 : i32
    %4 = arith.extui %3 : i1 to i32
    %c0_i32_3 = arith.constant 0 : i32
    %5 = arith.cmpi ne, %4, %c0_i32_3 : i32
    scf.if %5 {
      %c0_8 = arith.constant 0 : index
      %c0_9 = arith.constant 0 : index
      %12 = vector.load %arg6[%c0_8, %c0_9] : memref<1x256xf32, #tpu.memory_space<vmem>>, vector<1x256xf32>
      tpu.vector_store %arg6[%c0_8, %c0_9], %1 {strides = array<i32>} : memref<1x256xf32, #tpu.memory_space<vmem>>, vector<1x256xf32>,
      %c0_10 = arith.constant 0 : index
      %c0_11 = arith.constant 0 : index
      %13 = vector.load %arg7[%c0_10, %c0_11] : memref<1x256xf32, #tpu.memory_space<vmem>>, vector<1x256xf32>
      tpu.vector_store %arg7[%c0_10, %c0_11], %2 {strides = array<i32>} : memref<1x256xf32, #tpu.memory_space<vmem>>, vector<1x256xf32>,
    } else {
    }
    %c0_i32_4 = arith.constant 0 : i32
    %6 = arith.cmpi sgt, %arg1, %c0_i32_4 : i32
    %7 = arith.extui %6 : i1 to i32
    %c0_i32_5 = arith.constant 0 : i32
    %8 = arith.cmpi ne, %7, %c0_i32_5 : i32
    scf.if %8 {
      %c0_8 = arith.constant 0 : index
      %c0_9 = arith.constant 0 : index
      %12 = vector.load %arg6[%c0_8, %c0_9] : memref<1x256xf32, #tpu.memory_space<vmem>>, vector<1x256xf32>
      %13 = arith.addf %12, %1 : vector<1x256xf32>
      %c0_10 = arith.constant 0 : index
      %c0_11 = arith.constant 0 : index
      %14 = vector.load %arg6[%c0_10, %c0_11] : memref<1x256xf32, #tpu.memory_space<vmem>>, vector<1x256xf32>
      tpu.vector_store %arg6[%c0_10, %c0_11], %13 {strides = array<i32>} : memref<1x256xf32, #tpu.memory_space<vmem>>, vector<1x256xf32>,
      %c0_12 = arith.constant 0 : index
      %c0_13 = arith.constant 0 : index
      %15 = vector.load %arg7[%c0_12, %c0_13] : memref<1x256xf32, #tpu.memory_space<vmem>>, vector<1x256xf32>
      %16 = arith.maximumf %15, %2 : vector<1x256xf32>
      %c0_14 = arith.constant 0 : index
      %c0_15 = arith.constant 0 : index
      %17 = vector.load %arg7[%c0_14, %c0_15] : memref<1x256xf32, #tpu.memory_space<vmem>>, vector<1x256xf32>
      tpu.vector_store %arg7[%c0_14, %c0_15], %16 {strides = array<i32>} : memref<1x256xf32, #tpu.memory_space<vmem>>, vector<1x256xf32>,
    } else {
    }
    %c0_i32_6 = arith.constant 0 : i32
    %9 = arith.cmpi eq, %arg1, %c0_i32_6 : i32
    %10 = arith.extui %9 : i1 to i32
    %c0_i32_7 = arith.constant 0 : i32
    %11 = arith.cmpi ne, %10, %c0_i32_7 : i32
    scf.if %11 {
      %c0_8 = arith.constant 0 : index
      %c0_9 = arith.constant 0 : index
      %12 = vector.load %arg6[%c0_8, %c0_9] : memref<1x256xf32, #tpu.memory_space<vmem>>, vector<1x256xf32>
      %cst_10 = arith.constant 4.000000e+00 : f32
      %13 = vector.broadcast %cst_10 : f32 to vector<1x256xf32>
      %14 = arith.divf %12, %13 : vector<1x256xf32>
      %c0_11 = arith.constant 0 : index
      %c0_12 = arith.constant 0 : index
      %15 = vector.load %arg7[%c0_11, %c0_12] : memref<1x256xf32, #tpu.memory_space<vmem>>, vector<1x256xf32>
      %cst_13 = arith.constant 0.000000e+00 : f32
      %16 = vector.broadcast %cst_13 : f32 to vector<1x51xf32>
      %c0_14 = arith.constant 0 : index
      %c0_15 = arith.constant 0 : index
      %c0_16 = arith.constant 0 : index
      %17 = vector.load %arg8[%c0_14, %c0_15, %c0_16] : memref<2x1x358xf32, #tpu.memory_space<vmem>>, vector<1x1x51xf32>
      %18 = vector.shape_cast %17 : vector<1x1x51xf32> to vector<1x51xf32>
      %19 = vector.shape_cast %16 : vector<1x51xf32> to vector<1x1x51xf32>
      tpu.vector_store %arg8[%c0_14, %c0_15, %c0_16], %19 {strides = array<i32>} : memref<2x1x358xf32, #tpu.memory_space<vmem>>, vector<1x1x51xf32>,
      %c1 = arith.constant 1 : index
      %c0_17 = arith.constant 0 : index
      %c0_18 = arith.constant 0 : index
      %20 = vector.load %arg8[%c1, %c0_17, %c0_18] : memref<2x1x358xf32, #tpu.memory_space<vmem>>, vector<1x1x51xf32>
      %21 = vector.shape_cast %20 : vector<1x1x51xf32> to vector<1x51xf32>
      %22 = vector.shape_cast %16 : vector<1x51xf32> to vector<1x1x51xf32>
      tpu.vector_store %arg8[%c1, %c0_17, %c0_18], %22 {strides = array<i32>} : memref<2x1x358xf32, #tpu.memory_space<vmem>>, vector<1x1x51xf32>,
      %c0_19 = arith.constant 0 : index
      %c0_20 = arith.constant 0 : index
      %c307 = arith.constant 307 : index
      %23 = vector.load %arg8[%c0_19, %c0_20, %c307] : memref<2x1x358xf32, #tpu.memory_space<vmem>>, vector<1x1x51xf32>
      %24 = vector.shape_cast %23 : vector<1x1x51xf32> to vector<1x51xf32>
      %25 = vector.shape_cast %16 : vector<1x51xf32> to vector<1x1x51xf32>
      tpu.vector_store %arg8[%c0_19, %c0_20, %c307], %25 {strides = array<i32>} : memref<2x1x358xf32, #tpu.memory_space<vmem>>, vector<1x1x51xf32>,
      %c1_21 = arith.constant 1 : index
      %c0_22 = arith.constant 0 : index
      %c307_23 = arith.constant 307 : index
      %26 = vector.load %arg8[%c1_21, %c0_22, %c307_23] : memref<2x1x358xf32, #tpu.memory_space<vmem>>, vector<1x1x51xf32>
      %27 = vector.shape_cast %26 : vector<1x1x51xf32> to vector<1x51xf32>
      %28 = vector.shape_cast %16 : vector<1x51xf32> to vector<1x1x51xf32>
      tpu.vector_store %arg8[%c1_21, %c0_22, %c307_23], %28 {strides = array<i32>} : memref<2x1x358xf32, #tpu.memory_space<vmem>>, vector<1x1x51xf32>,
      %c0_24 = arith.constant 0 : index
      %c0_25 = arith.constant 0 : index
      %c51 = arith.constant 51 : index
      %29 = vector.load %arg8[%c0_24, %c0_25, %c51] : memref<2x1x358xf32, #tpu.memory_space<vmem>>, vector<1x1x256xf32>
      %30 = vector.shape_cast %29 : vector<1x1x256xf32> to vector<1x256xf32>
      %31 = vector.shape_cast %14 : vector<1x256xf32> to vector<1x1x256xf32>
      tpu.vector_store %arg8[%c0_24, %c0_25, %c51], %31 {strides = array<i32>} : memref<2x1x358xf32, #tpu.memory_space<vmem>>, vector<1x1x256xf32>,
      %c1_26 = arith.constant 1 : index
      %c0_27 = arith.constant 0 : index
      %c51_28 = arith.constant 51 : index
      %32 = vector.load %arg8[%c1_26, %c0_27, %c51_28] : memref<2x1x358xf32, #tpu.memory_space<vmem>>, vector<1x1x256xf32>
      %33 = vector.shape_cast %32 : vector<1x1x256xf32> to vector<1x256xf32>
      %34 = vector.shape_cast %15 : vector<1x256xf32> to vector<1x1x256xf32>
      tpu.vector_store %arg8[%c1_26, %c0_27, %c51_28], %34 {strides = array<i32>} : memref<2x1x358xf32, #tpu.memory_space<vmem>>, vector<1x1x256xf32>,
      %c0_29 = arith.constant 0 : index
      %c0_30 = arith.constant 0 : index
      %c0_31 = arith.constant 0 : index
      %35 = vector.load %arg4[%c0_29, %c0_30, %c0_31] : memref<7x1x256xf32, #tpu.memory_space<vmem>>, vector<1x1x256xf32>
      %36 = vector.shape_cast %35 : vector<1x1x256xf32> to vector<1x256xf32>
      %c1_32 = arith.constant 1 : index
      %c0_33 = arith.constant 0 : index
      %c0_34 = arith.constant 0 : index
      %37 = vector.load %arg4[%c1_32, %c0_33, %c0_34] : memref<7x1x256xf32, #tpu.memory_space<vmem>>, vector<1x1x256xf32>
      %38 = vector.shape_cast %37 : vector<1x1x256xf32> to vector<1x256xf32>
      %c2 = arith.constant 2 : index
      %c0_35 = arith.constant 0 : index
      %c0_36 = arith.constant 0 : index
      %39 = vector.load %arg4[%c2, %c0_35, %c0_36] : memref<7x1x256xf32, #tpu.memory_space<vmem>>, vector<1x1x256xf32>
      %40 = vector.shape_cast %39 : vector<1x1x256xf32> to vector<1x256xf32>
      %c3 = arith.constant 3 : index
      %c0_37 = arith.constant 0 : index
      %c0_38 = arith.constant 0 : index
      %41 = vector.load %arg4[%c3, %c0_37, %c0_38] : memref<7x1x256xf32, #tpu.memory_space<vmem>>, vector<1x1x256xf32>
      %42 = vector.shape_cast %41 : vector<1x1x256xf32> to vector<1x256xf32>
      %c4 = arith.constant 4 : index
      %c0_39 = arith.constant 0 : index
      %c0_40 = arith.constant 0 : index
      %43 = vector.load %arg4[%c4, %c0_39, %c0_40] : memref<7x1x256xf32, #tpu.memory_space<vmem>>, vector<1x1x256xf32>
      %44 = vector.shape_cast %43 : vector<1x1x256xf32> to vector<1x256xf32>
      %c5 = arith.constant 5 : index
      %c0_41 = arith.constant 0 : index
      %c0_42 = arith.constant 0 : index
      %45 = vector.load %arg4[%c5, %c0_41, %c0_42] : memref<7x1x256xf32, #tpu.memory_space<vmem>>, vector<1x1x256xf32>
      %46 = vector.shape_cast %45 : vector<1x1x256xf32> to vector<1x256xf32>
      %c6 = arith.constant 6 : index
      %c0_43 = arith.constant 0 : index
      %c0_44 = arith.constant 0 : index
      %47 = vector.load %arg4[%c6, %c0_43, %c0_44] : memref<7x1x256xf32, #tpu.memory_space<vmem>>, vector<1x1x256xf32>
      %48 = vector.shape_cast %47 : vector<1x1x256xf32> to vector<1x256xf32>
      %c0_45 = arith.constant 0 : index
      %c0_46 = arith.constant 0 : index
      %c0_47 = arith.constant 0 : index
      %49 = vector.load %arg8[%c0_45, %c0_46, %c0_47] : memref<2x1x358xf32, #tpu.memory_space<vmem>>, vector<1x1x262xf32>
      %50 = vector.shape_cast %49 : vector<1x1x262xf32> to vector<1x262xf32>
      %c1_48 = arith.constant 1 : index
      %c0_49 = arith.constant 0 : index
      %c0_50 = arith.constant 0 : index
      %51 = vector.load %arg8[%c1_48, %c0_49, %c0_50] : memref<2x1x358xf32, #tpu.memory_space<vmem>>, vector<1x1x262xf32>
      %52 = vector.shape_cast %51 : vector<1x1x262xf32> to vector<1x262xf32>
      %c0_51 = arith.constant 0 : index
      %53 = memref.load %arg3[%c0_51] : memref<98xf32, #tpu.memory_space<smem>>
      %c49 = arith.constant 49 : index
      %54 = memref.load %arg3[%c49] : memref<98xf32, #tpu.memory_space<smem>>
      %55 = vector.extract_strided_slice %50 {offsets = [0, 0], sizes = [1, 256], strides = [1, 1]} : vector<1x262xf32> to vector<1x256xf32>
      %56 = vector.broadcast %53 : f32 to vector<1x256xf32>
      %57 = arith.mulf %55, %56 : vector<1x256xf32>
      %58 = vector.extract_strided_slice %52 {offsets = [0, 0], sizes = [1, 256], strides = [1, 1]} : vector<1x262xf32> to vector<1x256xf32>
      %59 = vector.broadcast %54 : f32 to vector<1x256xf32>
      %60 = arith.mulf %58, %59 : vector<1x256xf32>
      %61 = arith.addf %57, %60 : vector<1x256xf32>
      %62 = arith.mulf %61, %36 : vector<1x256xf32>
      %c1_52 = arith.constant 1 : index
      %63 = memref.load %arg3[%c1_52] : memref<98xf32, #tpu.memory_space<smem>>
      %c50 = arith.constant 50 : index
      %64 = memref.load %arg3[%c50] : memref<98xf32, #tpu.memory_space<smem>>
      %65 = vector.extract_strided_slice %50 {offsets = [0, 1], sizes = [1, 256], strides = [1, 1]} : vector<1x262xf32> to vector<1x256xf32>
      %66 = vector.broadcast %63 : f32 to vector<1x256xf32>
      %67 = arith.mulf %65, %66 : vector<1x256xf32>
      %68 = vector.extract_strided_slice %52 {offsets = [0, 1], sizes = [1, 256], strides = [1, 1]} : vector<1x262xf32> to vector<1x256xf32>
      %69 = vector.broadcast %64 : f32 to vector<1x256xf32>
      %70 = arith.mulf %68, %69 : vector<1x256xf32>
      %71 = arith.addf %67, %70 : vector<1x256xf32>
      %72 = arith.mulf %71, %38 : vector<1x256xf32>
      %73 = arith.addf %62, %72 : vector<1x256xf32>
      %c2_53 = arith.constant 2 : index
      %74 = memref.load %arg3[%c2_53] : memref<98xf32, #tpu.memory_space<smem>>
      %c51_54 = arith.constant 51 : index
      %75 = memref.load %arg3[%c51_54] : memref<98xf32, #tpu.memory_space<smem>>
      %76 = vector.extract_strided_slice %50 {offsets = [0, 2], sizes = [1, 256], strides = [1, 1]} : vector<1x262xf32> to vector<1x256xf32>
      %77 = vector.broadcast %74 : f32 to vector<1x256xf32>
      %78 = arith.mulf %76, %77 : vector<1x256xf32>
      %79 = vector.extract_strided_slice %52 {offsets = [0, 2], sizes = [1, 256], strides = [1, 1]} : vector<1x262xf32> to vector<1x256xf32>
      %80 = vector.broadcast %75 : f32 to vector<1x256xf32>
      %81 = arith.mulf %79, %80 : vector<1x256xf32>
      %82 = arith.addf %78, %81 : vector<1x256xf32>
      %83 = arith.mulf %82, %40 : vector<1x256xf32>
      %84 = arith.addf %73, %83 : vector<1x256xf32>
      %c3_55 = arith.constant 3 : index
      %85 = memref.load %arg3[%c3_55] : memref<98xf32, #tpu.memory_space<smem>>
      %c52 = arith.constant 52 : index
      %86 = memref.load %arg3[%c52] : memref<98xf32, #tpu.memory_space<smem>>
      %87 = vector.extract_strided_slice %50 {offsets = [0, 3], sizes = [1, 256], strides = [1, 1]} : vector<1x262xf32> to vector<1x256xf32>
      %88 = vector.broadcast %85 : f32 to vector<1x256xf32>
      %89 = arith.mulf %87, %88 : vector<1x256xf32>
      %90 = vector.extract_strided_slice %52 {offsets = [0, 3], sizes = [1, 256], strides = [1, 1]} : vector<1x262xf32> to vector<1x256xf32>
      %91 = vector.broadcast %86 : f32 to vector<1x256xf32>
      %92 = arith.mulf %90, %91 : vector<1x256xf32>
      %93 = arith.addf %89, %92 : vector<1x256xf32>
      %94 = arith.mulf %93, %42 : vector<1x256xf32>
      %95 = arith.addf %84, %94 : vector<1x256xf32>
      %c4_56 = arith.constant 4 : index
      %96 = memref.load %arg3[%c4_56] : memref<98xf32, #tpu.memory_space<smem>>
      %c53 = arith.constant 53 : index
      %97 = memref.load %arg3[%c53] : memref<98xf32, #tpu.memory_space<smem>>
      %98 = vector.extract_strided_slice %50 {offsets = [0, 4], sizes = [1, 256], strides = [1, 1]} : vector<1x262xf32> to vector<1x256xf32>
      %99 = vector.broadcast %96 : f32 to vector<1x256xf32>
      %100 = arith.mulf %98, %99 : vector<1x256xf32>
      %101 = vector.extract_strided_slice %52 {offsets = [0, 4], sizes = [1, 256], strides = [1, 1]} : vector<1x262xf32> to vector<1x256xf32>
      %102 = vector.broadcast %97 : f32 to vector<1x256xf32>
      %103 = arith.mulf %101, %102 : vector<1x256xf32>
      %104 = arith.addf %100, %103 : vector<1x256xf32>
      %105 = arith.mulf %104, %44 : vector<1x256xf32>
      %106 = arith.addf %95, %105 : vector<1x256xf32>
      %c5_57 = arith.constant 5 : index
      %107 = memref.load %arg3[%c5_57] : memref<98xf32, #tpu.memory_space<smem>>
      %c54 = arith.constant 54 : index
      %108 = memref.load %arg3[%c54] : memref<98xf32, #tpu.memory_space<smem>>
      %109 = vector.extract_strided_slice %50 {offsets = [0, 5], sizes = [1, 256], strides = [1, 1]} : vector<1x262xf32> to vector<1x256xf32>
      %110 = vector.broadcast %107 : f32 to vector<1x256xf32>
      %111 = arith.mulf %109, %110 : vector<1x256xf32>
      %112 = vector.extract_strided_slice %52 {offsets = [0, 5], sizes = [1, 256], strides = [1, 1]} : vector<1x262xf32> to vector<1x256xf32>
      %113 = vector.broadcast %108 : f32 to vector<1x256xf32>
      %114 = arith.mulf %112, %113 : vector<1x256xf32>
      %115 = arith.addf %111, %114 : vector<1x256xf32>
      %116 = arith.mulf %115, %46 : vector<1x256xf32>
      %117 = arith.addf %106, %116 : vector<1x256xf32>
      %c6_58 = arith.constant 6 : index
      %118 = memref.load %arg3[%c6_58] : memref<98xf32, #tpu.memory_space<smem>>
      %c55 = arith.constant 55 : index
      %119 = memref.load %arg3[%c55] : memref<98xf32, #tpu.memory_space<smem>>
      %120 = vector.extract_strided_slice %50 {offsets = [0, 6], sizes = [1, 256], strides = [1, 1]} : vector<1x262xf32> to vector<1x256xf32>
      %121 = vector.broadcast %118 : f32 to vector<1x256xf32>
      %122 = arith.mulf %120, %121 : vector<1x256xf32>
      %123 = vector.extract_strided_slice %52 {offsets = [0, 6], sizes = [1, 256], strides = [1, 1]} : vector<1x262xf32> to vector<1x256xf32>
      %124 = vector.broadcast %119 : f32 to vector<1x256xf32>
      %125 = arith.mulf %123, %124 : vector<1x256xf32>
      %126 = arith.addf %122, %125 : vector<1x256xf32>
      %127 = arith.mulf %126, %48 : vector<1x256xf32>
      %128 = arith.addf %117, %127 : vector<1x256xf32>
      %c0_59 = arith.constant 0 : index
      %c0_60 = arith.constant 0 : index
      %c16 = arith.constant 16 : index
      %129 = vector.load %arg8[%c0_59, %c0_60, %c16] : memref<2x1x358xf32, #tpu.memory_space<vmem>>, vector<1x1x262xf32>
      %130 = vector.shape_cast %129 : vector<1x1x262xf32> to vector<1x262xf32>
      %c1_61 = arith.constant 1 : index
      %c0_62 = arith.constant 0 : index
      %c16_63 = arith.constant 16 : index
      %131 = vector.load %arg8[%c1_61, %c0_62, %c16_63] : memref<2x1x358xf32, #tpu.memory_space<vmem>>, vector<1x1x262xf32>
      %132 = vector.shape_cast %131 : vector<1x1x262xf32> to vector<1x262xf32>
      %c7 = arith.constant 7 : index
      %133 = memref.load %arg3[%c7] : memref<98xf32, #tpu.memory_space<smem>>
      %c56 = arith.constant 56 : index
      %134 = memref.load %arg3[%c56] : memref<98xf32, #tpu.memory_space<smem>>
      %135 = vector.extract_strided_slice %130 {offsets = [0, 0], sizes = [1, 256], strides = [1, 1]} : vector<1x262xf32> to vector<1x256xf32>
      %136 = vector.broadcast %133 : f32 to vector<1x256xf32>
      %137 = arith.mulf %135, %136 : vector<1x256xf32>
      %138 = vector.extract_strided_slice %132 {offsets = [0, 0], sizes = [1, 256], strides = [1, 1]} : vector<1x262xf32> to vector<1x256xf32>
      %139 = vector.broadcast %134 : f32 to vector<1x256xf32>
      %140 = arith.mulf %138, %139 : vector<1x256xf32>
      %141 = arith.addf %137, %140 : vector<1x256xf32>
      %142 = arith.mulf %141, %36 : vector<1x256xf32>
      %c8 = arith.constant 8 : index
      %143 = memref.load %arg3[%c8] : memref<98xf32, #tpu.memory_space<smem>>
      %c57 = arith.constant 57 : index
      %144 = memref.load %arg3[%c57] : memref<98xf32, #tpu.memory_space<smem>>
      %145 = vector.extract_strided_slice %130 {offsets = [0, 1], sizes = [1, 256], strides = [1, 1]} : vector<1x262xf32> to vector<1x256xf32>
      %146 = vector.broadcast %143 : f32 to vector<1x256xf32>
      %147 = arith.mulf %145, %146 : vector<1x256xf32>
      %148 = vector.extract_strided_slice %132 {offsets = [0, 1], sizes = [1, 256], strides = [1, 1]} : vector<1x262xf32> to vector<1x256xf32>
      %149 = vector.broadcast %144 : f32 to vector<1x256xf32>
      %150 = arith.mulf %148, %149 : vector<1x256xf32>
      %151 = arith.addf %147, %150 : vector<1x256xf32>
      %152 = arith.mulf %151, %38 : vector<1x256xf32>
      %153 = arith.addf %142, %152 : vector<1x256xf32>
      %c9 = arith.constant 9 : index
      %154 = memref.load %arg3[%c9] : memref<98xf32, #tpu.memory_space<smem>>
      %c58 = arith.constant 58 : index
      %155 = memref.load %arg3[%c58] : memref<98xf32, #tpu.memory_space<smem>>
      %156 = vector.extract_strided_slice %130 {offsets = [0, 2], sizes = [1, 256], strides = [1, 1]} : vector<1x262xf32> to vector<1x256xf32>
      %157 = vector.broadcast %154 : f32 to vector<1x256xf32>
      %158 = arith.mulf %156, %157 : vector<1x256xf32>
      %159 = vector.extract_strided_slice %132 {offsets = [0, 2], sizes = [1, 256], strides = [1, 1]} : vector<1x262xf32> to vector<1x256xf32>
      %160 = vector.broadcast %155 : f32 to vector<1x256xf32>
      %161 = arith.mulf %159, %160 : vector<1x256xf32>
      %162 = arith.addf %158, %161 : vector<1x256xf32>
      %163 = arith.mulf %162, %40 : vector<1x256xf32>
      %164 = arith.addf %153, %163 : vector<1x256xf32>
      %c10 = arith.constant 10 : index
      %165 = memref.load %arg3[%c10] : memref<98xf32, #tpu.memory_space<smem>>
      %c59 = arith.constant 59 : index
      %166 = memref.load %arg3[%c59] : memref<98xf32, #tpu.memory_space<smem>>
      %167 = vector.extract_strided_slice %130 {offsets = [0, 3], sizes = [1, 256], strides = [1, 1]} : vector<1x262xf32> to vector<1x256xf32>
      %168 = vector.broadcast %165 : f32 to vector<1x256xf32>
      %169 = arith.mulf %167, %168 : vector<1x256xf32>
      %170 = vector.extract_strided_slice %132 {offsets = [0, 3], sizes = [1, 256], strides = [1, 1]} : vector<1x262xf32> to vector<1x256xf32>
      %171 = vector.broadcast %166 : f32 to vector<1x256xf32>
      %172 = arith.mulf %170, %171 : vector<1x256xf32>
      %173 = arith.addf %169, %172 : vector<1x256xf32>
      %174 = arith.mulf %173, %42 : vector<1x256xf32>
      %175 = arith.addf %164, %174 : vector<1x256xf32>
      %c11 = arith.constant 11 : index
      %176 = memref.load %arg3[%c11] : memref<98xf32, #tpu.memory_space<smem>>
      %c60 = arith.constant 60 : index
      %177 = memref.load %arg3[%c60] : memref<98xf32, #tpu.memory_space<smem>>
      %178 = vector.extract_strided_slice %130 {offsets = [0, 4], sizes = [1, 256], strides = [1, 1]} : vector<1x262xf32> to vector<1x256xf32>
      %179 = vector.broadcast %176 : f32 to vector<1x256xf32>
      %180 = arith.mulf %178, %179 : vector<1x256xf32>
      %181 = vector.extract_strided_slice %132 {offsets = [0, 4], sizes = [1, 256], strides = [1, 1]} : vector<1x262xf32> to vector<1x256xf32>
      %182 = vector.broadcast %177 : f32 to vector<1x256xf32>
      %183 = arith.mulf %181, %182 : vector<1x256xf32>
      %184 = arith.addf %180, %183 : vector<1x256xf32>
      %185 = arith.mulf %184, %44 : vector<1x256xf32>
      %186 = arith.addf %175, %185 : vector<1x256xf32>
      %c12 = arith.constant 12 : index
      %187 = memref.load %arg3[%c12] : memref<98xf32, #tpu.memory_space<smem>>
      %c61 = arith.constant 61 : index
      %188 = memref.load %arg3[%c61] : memref<98xf32, #tpu.memory_space<smem>>
      %189 = vector.extract_strided_slice %130 {offsets = [0, 5], sizes = [1, 256], strides = [1, 1]} : vector<1x262xf32> to vector<1x256xf32>
      %190 = vector.broadcast %187 : f32 to vector<1x256xf32>
      %191 = arith.mulf %189, %190 : vector<1x256xf32>
      %192 = vector.extract_strided_slice %132 {offsets = [0, 5], sizes = [1, 256], strides = [1, 1]} : vector<1x262xf32> to vector<1x256xf32>
      %193 = vector.broadcast %188 : f32 to vector<1x256xf32>
      %194 = arith.mulf %192, %193 : vector<1x256xf32>
      %195 = arith.addf %191, %194 : vector<1x256xf32>
      %196 = arith.mulf %195, %46 : vector<1x256xf32>
      %197 = arith.addf %186, %196 : vector<1x256xf32>
      %c13 = arith.constant 13 : index
      %198 = memref.load %arg3[%c13] : memref<98xf32, #tpu.memory_space<smem>>
      %c62 = arith.constant 62 : index
      %199 = memref.load %arg3[%c62] : memref<98xf32, #tpu.memory_space<smem>>
      %200 = vector.extract_strided_slice %130 {offsets = [0, 6], sizes = [1, 256], strides = [1, 1]} : vector<1x262xf32> to vector<1x256xf32>
      %201 = vector.broadcast %198 : f32 to vector<1x256xf32>
      %202 = arith.mulf %200, %201 : vector<1x256xf32>
      %203 = vector.extract_strided_slice %132 {offsets = [0, 6], sizes = [1, 256], strides = [1, 1]} : vector<1x262xf32> to vector<1x256xf32>
      %204 = vector.broadcast %199 : f32 to vector<1x256xf32>
      %205 = arith.mulf %203, %204 : vector<1x256xf32>
      %206 = arith.addf %202, %205 : vector<1x256xf32>
      %207 = arith.mulf %206, %48 : vector<1x256xf32>
      %208 = arith.addf %197, %207 : vector<1x256xf32>
      %c0_64 = arith.constant 0 : index
      %c0_65 = arith.constant 0 : index
      %c32 = arith.constant 32 : index
      %209 = vector.load %arg8[%c0_64, %c0_65, %c32] : memref<2x1x358xf32, #tpu.memory_space<vmem>>, vector<1x1x262xf32>
      %210 = vector.shape_cast %209 : vector<1x1x262xf32> to vector<1x262xf32>
      %c1_66 = arith.constant 1 : index
      %c0_67 = arith.constant 0 : index
      %c32_68 = arith.constant 32 : index
      %211 = vector.load %arg8[%c1_66, %c0_67, %c32_68] : memref<2x1x358xf32, #tpu.memory_space<vmem>>, vector<1x1x262xf32>
      %212 = vector.shape_cast %211 : vector<1x1x262xf32> to vector<1x262xf32>
      %c14 = arith.constant 14 : index
      %213 = memref.load %arg3[%c14] : memref<98xf32, #tpu.memory_space<smem>>
      %c63 = arith.constant 63 : index
      %214 = memref.load %arg3[%c63] : memref<98xf32, #tpu.memory_space<smem>>
      %215 = vector.extract_strided_slice %210 {offsets = [0, 0], sizes = [1, 256], strides = [1, 1]} : vector<1x262xf32> to vector<1x256xf32>
      %216 = vector.broadcast %213 : f32 to vector<1x256xf32>
      %217 = arith.mulf %215, %216 : vector<1x256xf32>
      %218 = vector.extract_strided_slice %212 {offsets = [0, 0], sizes = [1, 256], strides = [1, 1]} : vector<1x262xf32> to vector<1x256xf32>
      %219 = vector.broadcast %214 : f32 to vector<1x256xf32>
      %220 = arith.mulf %218, %219 : vector<1x256xf32>
      %221 = arith.addf %217, %220 : vector<1x256xf32>
      %222 = arith.mulf %221, %36 : vector<1x256xf32>
      %c15 = arith.constant 15 : index
      %223 = memref.load %arg3[%c15] : memref<98xf32, #tpu.memory_space<smem>>
      %c64 = arith.constant 64 : index
      %224 = memref.load %arg3[%c64] : memref<98xf32, #tpu.memory_space<smem>>
      %225 = vector.extract_strided_slice %210 {offsets = [0, 1], sizes = [1, 256], strides = [1, 1]} : vector<1x262xf32> to vector<1x256xf32>
      %226 = vector.broadcast %223 : f32 to vector<1x256xf32>
      %227 = arith.mulf %225, %226 : vector<1x256xf32>
      %228 = vector.extract_strided_slice %212 {offsets = [0, 1], sizes = [1, 256], strides = [1, 1]} : vector<1x262xf32> to vector<1x256xf32>
      %229 = vector.broadcast %224 : f32 to vector<1x256xf32>
      %230 = arith.mulf %228, %229 : vector<1x256xf32>
      %231 = arith.addf %227, %230 : vector<1x256xf32>
      %232 = arith.mulf %231, %38 : vector<1x256xf32>
      %233 = arith.addf %222, %232 : vector<1x256xf32>
      %c16_69 = arith.constant 16 : index
      %234 = memref.load %arg3[%c16_69] : memref<98xf32, #tpu.memory_space<smem>>
      %c65 = arith.constant 65 : index
      %235 = memref.load %arg3[%c65] : memref<98xf32, #tpu.memory_space<smem>>
      %236 = vector.extract_strided_slice %210 {offsets = [0, 2], sizes = [1, 256], strides = [1, 1]} : vector<1x262xf32> to vector<1x256xf32>
      %237 = vector.broadcast %234 : f32 to vector<1x256xf32>
      %238 = arith.mulf %236, %237 : vector<1x256xf32>
      %239 = vector.extract_strided_slice %212 {offsets = [0, 2], sizes = [1, 256], strides = [1, 1]} : vector<1x262xf32> to vector<1x256xf32>
      %240 = vector.broadcast %235 : f32 to vector<1x256xf32>
      %241 = arith.mulf %239, %240 : vector<1x256xf32>
      %242 = arith.addf %238, %241 : vector<1x256xf32>
      %243 = arith.mulf %242, %40 : vector<1x256xf32>
      %244 = arith.addf %233, %243 : vector<1x256xf32>
      %c17 = arith.constant 17 : index
      %245 = memref.load %arg3[%c17] : memref<98xf32, #tpu.memory_space<smem>>
      %c66 = arith.constant 66 : index
      %246 = memref.load %arg3[%c66] : memref<98xf32, #tpu.memory_space<smem>>
      %247 = vector.extract_strided_slice %210 {offsets = [0, 3], sizes = [1, 256], strides = [1, 1]} : vector<1x262xf32> to vector<1x256xf32>
      %248 = vector.broadcast %245 : f32 to vector<1x256xf32>
      %249 = arith.mulf %247, %248 : vector<1x256xf32>
      %250 = vector.extract_strided_slice %212 {offsets = [0, 3], sizes = [1, 256], strides = [1, 1]} : vector<1x262xf32> to vector<1x256xf32>
      %251 = vector.broadcast %246 : f32 to vector<1x256xf32>
      %252 = arith.mulf %250, %251 : vector<1x256xf32>
      %253 = arith.addf %249, %252 : vector<1x256xf32>
      %254 = arith.mulf %253, %42 : vector<1x256xf32>
      %255 = arith.addf %244, %254 : vector<1x256xf32>
      %c18 = arith.constant 18 : index
      %256 = memref.load %arg3[%c18] : memref<98xf32, #tpu.memory_space<smem>>
      %c67 = arith.constant 67 : index
      %257 = memref.load %arg3[%c67] : memref<98xf32, #tpu.memory_space<smem>>
      %258 = vector.extract_strided_slice %210 {offsets = [0, 4], sizes = [1, 256], strides = [1, 1]} : vector<1x262xf32> to vector<1x256xf32>
      %259 = vector.broadcast %256 : f32 to vector<1x256xf32>
      %260 = arith.mulf %258, %259 : vector<1x256xf32>
      %261 = vector.extract_strided_slice %212 {offsets = [0, 4], sizes = [1, 256], strides = [1, 1]} : vector<1x262xf32> to vector<1x256xf32>
      %262 = vector.broadcast %257 : f32 to vector<1x256xf32>
      %263 = arith.mulf %261, %262 : vector<1x256xf32>
      %264 = arith.addf %260, %263 : vector<1x256xf32>
      %265 = arith.mulf %264, %44 : vector<1x256xf32>
      %266 = arith.addf %255, %265 : vector<1x256xf32>
      %c19 = arith.constant 19 : index
      %267 = memref.load %arg3[%c19] : memref<98xf32, #tpu.memory_space<smem>>
      %c68 = arith.constant 68 : index
      %268 = memref.load %arg3[%c68] : memref<98xf32, #tpu.memory_space<smem>>
      %269 = vector.extract_strided_slice %210 {offsets = [0, 5], sizes = [1, 256], strides = [1, 1]} : vector<1x262xf32> to vector<1x256xf32>
      %270 = vector.broadcast %267 : f32 to vector<1x256xf32>
      %271 = arith.mulf %269, %270 : vector<1x256xf32>
      %272 = vector.extract_strided_slice %212 {offsets = [0, 5], sizes = [1, 256], strides = [1, 1]} : vector<1x262xf32> to vector<1x256xf32>
      %273 = vector.broadcast %268 : f32 to vector<1x256xf32>
      %274 = arith.mulf %272, %273 : vector<1x256xf32>
      %275 = arith.addf %271, %274 : vector<1x256xf32>
      %276 = arith.mulf %275, %46 : vector<1x256xf32>
      %277 = arith.addf %266, %276 : vector<1x256xf32>
      %c20 = arith.constant 20 : index
      %278 = memref.load %arg3[%c20] : memref<98xf32, #tpu.memory_space<smem>>
      %c69 = arith.constant 69 : index
      %279 = memref.load %arg3[%c69] : memref<98xf32, #tpu.memory_space<smem>>
      %280 = vector.extract_strided_slice %210 {offsets = [0, 6], sizes = [1, 256], strides = [1, 1]} : vector<1x262xf32> to vector<1x256xf32>
      %281 = vector.broadcast %278 : f32 to vector<1x256xf32>
      %282 = arith.mulf %280, %281 : vector<1x256xf32>
      %283 = vector.extract_strided_slice %212 {offsets = [0, 6], sizes = [1, 256], strides = [1, 1]} : vector<1x262xf32> to vector<1x256xf32>
      %284 = vector.broadcast %279 : f32 to vector<1x256xf32>
      %285 = arith.mulf %283, %284 : vector<1x256xf32>
      %286 = arith.addf %282, %285 : vector<1x256xf32>
      %287 = arith.mulf %286, %48 : vector<1x256xf32>
      %288 = arith.addf %277, %287 : vector<1x256xf32>
      %c0_70 = arith.constant 0 : index
      %c0_71 = arith.constant 0 : index
      %c48 = arith.constant 48 : index
      %289 = vector.load %arg8[%c0_70, %c0_71, %c48] : memref<2x1x358xf32, #tpu.memory_space<vmem>>, vector<1x1x262xf32>
      %290 = vector.shape_cast %289 : vector<1x1x262xf32> to vector<1x262xf32>
      %c1_72 = arith.constant 1 : index
      %c0_73 = arith.constant 0 : index
      %c48_74 = arith.constant 48 : index
      %291 = vector.load %arg8[%c1_72, %c0_73, %c48_74] : memref<2x1x358xf32, #tpu.memory_space<vmem>>, vector<1x1x262xf32>
      %292 = vector.shape_cast %291 : vector<1x1x262xf32> to vector<1x262xf32>
      %c21 = arith.constant 21 : index
      %293 = memref.load %arg3[%c21] : memref<98xf32, #tpu.memory_space<smem>>
      %c70 = arith.constant 70 : index
      %294 = memref.load %arg3[%c70] : memref<98xf32, #tpu.memory_space<smem>>
      %295 = vector.extract_strided_slice %290 {offsets = [0, 0], sizes = [1, 256], strides = [1, 1]} : vector<1x262xf32> to vector<1x256xf32>
      %296 = vector.broadcast %293 : f32 to vector<1x256xf32>
      %297 = arith.mulf %295, %296 : vector<1x256xf32>
      %298 = vector.extract_strided_slice %292 {offsets = [0, 0], sizes = [1, 256], strides = [1, 1]} : vector<1x262xf32> to vector<1x256xf32>
      %299 = vector.broadcast %294 : f32 to vector<1x256xf32>
      %300 = arith.mulf %298, %299 : vector<1x256xf32>
      %301 = arith.addf %297, %300 : vector<1x256xf32>
      %302 = arith.mulf %301, %36 : vector<1x256xf32>
      %c22 = arith.constant 22 : index
      %303 = memref.load %arg3[%c22] : memref<98xf32, #tpu.memory_space<smem>>
      %c71 = arith.constant 71 : index
      %304 = memref.load %arg3[%c71] : memref<98xf32, #tpu.memory_space<smem>>
      %305 = vector.extract_strided_slice %290 {offsets = [0, 1], sizes = [1, 256], strides = [1, 1]} : vector<1x262xf32> to vector<1x256xf32>
      %306 = vector.broadcast %303 : f32 to vector<1x256xf32>
      %307 = arith.mulf %305, %306 : vector<1x256xf32>
      %308 = vector.extract_strided_slice %292 {offsets = [0, 1], sizes = [1, 256], strides = [1, 1]} : vector<1x262xf32> to vector<1x256xf32>
      %309 = vector.broadcast %304 : f32 to vector<1x256xf32>
      %310 = arith.mulf %308, %309 : vector<1x256xf32>
      %311 = arith.addf %307, %310 : vector<1x256xf32>
      %312 = arith.mulf %311, %38 : vector<1x256xf32>
      %313 = arith.addf %302, %312 : vector<1x256xf32>
      %c23 = arith.constant 23 : index
      %314 = memref.load %arg3[%c23] : memref<98xf32, #tpu.memory_space<smem>>
      %c72 = arith.constant 72 : index
      %315 = memref.load %arg3[%c72] : memref<98xf32, #tpu.memory_space<smem>>
      %316 = vector.extract_strided_slice %290 {offsets = [0, 2], sizes = [1, 256], strides = [1, 1]} : vector<1x262xf32> to vector<1x256xf32>
      %317 = vector.broadcast %314 : f32 to vector<1x256xf32>
      %318 = arith.mulf %316, %317 : vector<1x256xf32>
      %319 = vector.extract_strided_slice %292 {offsets = [0, 2], sizes = [1, 256], strides = [1, 1]} : vector<1x262xf32> to vector<1x256xf32>
      %320 = vector.broadcast %315 : f32 to vector<1x256xf32>
      %321 = arith.mulf %319, %320 : vector<1x256xf32>
      %322 = arith.addf %318, %321 : vector<1x256xf32>
      %323 = arith.mulf %322, %40 : vector<1x256xf32>
      %324 = arith.addf %313, %323 : vector<1x256xf32>
      %c24 = arith.constant 24 : index
      %325 = memref.load %arg3[%c24] : memref<98xf32, #tpu.memory_space<smem>>
      %c73 = arith.constant 73 : index
      %326 = memref.load %arg3[%c73] : memref<98xf32, #tpu.memory_space<smem>>
      %327 = vector.extract_strided_slice %290 {offsets = [0, 3], sizes = [1, 256], strides = [1, 1]} : vector<1x262xf32> to vector<1x256xf32>
      %328 = vector.broadcast %325 : f32 to vector<1x256xf32>
      %329 = arith.mulf %327, %328 : vector<1x256xf32>
      %330 = vector.extract_strided_slice %292 {offsets = [0, 3], sizes = [1, 256], strides = [1, 1]} : vector<1x262xf32> to vector<1x256xf32>
      %331 = vector.broadcast %326 : f32 to vector<1x256xf32>
      %332 = arith.mulf %330, %331 : vector<1x256xf32>
      %333 = arith.addf %329, %332 : vector<1x256xf32>
      %334 = arith.mulf %333, %42 : vector<1x256xf32>
      %335 = arith.addf %324, %334 : vector<1x256xf32>
      %c25 = arith.constant 25 : index
      %336 = memref.load %arg3[%c25] : memref<98xf32, #tpu.memory_space<smem>>
      %c74 = arith.constant 74 : index
      %337 = memref.load %arg3[%c74] : memref<98xf32, #tpu.memory_space<smem>>
      %338 = vector.extract_strided_slice %290 {offsets = [0, 4], sizes = [1, 256], strides = [1, 1]} : vector<1x262xf32> to vector<1x256xf32>
      %339 = vector.broadcast %336 : f32 to vector<1x256xf32>
      %340 = arith.mulf %338, %339 : vector<1x256xf32>
      %341 = vector.extract_strided_slice %292 {offsets = [0, 4], sizes = [1, 256], strides = [1, 1]} : vector<1x262xf32> to vector<1x256xf32>
      %342 = vector.broadcast %337 : f32 to vector<1x256xf32>
      %343 = arith.mulf %341, %342 : vector<1x256xf32>
      %344 = arith.addf %340, %343 : vector<1x256xf32>
      %345 = arith.mulf %344, %44 : vector<1x256xf32>
      %346 = arith.addf %335, %345 : vector<1x256xf32>
      %c26 = arith.constant 26 : index
      %347 = memref.load %arg3[%c26] : memref<98xf32, #tpu.memory_space<smem>>
      %c75 = arith.constant 75 : index
      %348 = memref.load %arg3[%c75] : memref<98xf32, #tpu.memory_space<smem>>
      %349 = vector.extract_strided_slice %290 {offsets = [0, 5], sizes = [1, 256], strides = [1, 1]} : vector<1x262xf32> to vector<1x256xf32>
      %350 = vector.broadcast %347 : f32 to vector<1x256xf32>
      %351 = arith.mulf %349, %350 : vector<1x256xf32>
      %352 = vector.extract_strided_slice %292 {offsets = [0, 5], sizes = [1, 256], strides = [1, 1]} : vector<1x262xf32> to vector<1x256xf32>
      %353 = vector.broadcast %348 : f32 to vector<1x256xf32>
      %354 = arith.mulf %352, %353 : vector<1x256xf32>
      %355 = arith.addf %351, %354 : vector<1x256xf32>
      %356 = arith.mulf %355, %46 : vector<1x256xf32>
      %357 = arith.addf %346, %356 : vector<1x256xf32>
      %c27 = arith.constant 27 : index
      %358 = memref.load %arg3[%c27] : memref<98xf32, #tpu.memory_space<smem>>
      %c76 = arith.constant 76 : index
      %359 = memref.load %arg3[%c76] : memref<98xf32, #tpu.memory_space<smem>>
      %360 = vector.extract_strided_slice %290 {offsets = [0, 6], sizes = [1, 256], strides = [1, 1]} : vector<1x262xf32> to vector<1x256xf32>
      %361 = vector.broadcast %358 : f32 to vector<1x256xf32>
      %362 = arith.mulf %360, %361 : vector<1x256xf32>
      %363 = vector.extract_strided_slice %292 {offsets = [0, 6], sizes = [1, 256], strides = [1, 1]} : vector<1x262xf32> to vector<1x256xf32>
      %364 = vector.broadcast %359 : f32 to vector<1x256xf32>
      %365 = arith.mulf %363, %364 : vector<1x256xf32>
      %366 = arith.addf %362, %365 : vector<1x256xf32>
      %367 = arith.mulf %366, %48 : vector<1x256xf32>
      %368 = arith.addf %357, %367 : vector<1x256xf32>
      %c0_75 = arith.constant 0 : index
      %c0_76 = arith.constant 0 : index
      %c64_77 = arith.constant 64 : index
      %369 = vector.load %arg8[%c0_75, %c0_76, %c64_77] : memref<2x1x358xf32, #tpu.memory_space<vmem>>, vector<1x1x262xf32>
      %370 = vector.shape_cast %369 : vector<1x1x262xf32> to vector<1x262xf32>
      %c1_78 = arith.constant 1 : index
      %c0_79 = arith.constant 0 : index
      %c64_80 = arith.constant 64 : index
      %371 = vector.load %arg8[%c1_78, %c0_79, %c64_80] : memref<2x1x358xf32, #tpu.memory_space<vmem>>, vector<1x1x262xf32>
      %372 = vector.shape_cast %371 : vector<1x1x262xf32> to vector<1x262xf32>
      %c28 = arith.constant 28 : index
      %373 = memref.load %arg3[%c28] : memref<98xf32, #tpu.memory_space<smem>>
      %c77 = arith.constant 77 : index
      %374 = memref.load %arg3[%c77] : memref<98xf32, #tpu.memory_space<smem>>
      %375 = vector.extract_strided_slice %370 {offsets = [0, 0], sizes = [1, 256], strides = [1, 1]} : vector<1x262xf32> to vector<1x256xf32>
      %376 = vector.broadcast %373 : f32 to vector<1x256xf32>
      %377 = arith.mulf %375, %376 : vector<1x256xf32>
      %378 = vector.extract_strided_slice %372 {offsets = [0, 0], sizes = [1, 256], strides = [1, 1]} : vector<1x262xf32> to vector<1x256xf32>
      %379 = vector.broadcast %374 : f32 to vector<1x256xf32>
      %380 = arith.mulf %378, %379 : vector<1x256xf32>
      %381 = arith.addf %377, %380 : vector<1x256xf32>
      %382 = arith.mulf %381, %36 : vector<1x256xf32>
      %c29 = arith.constant 29 : index
      %383 = memref.load %arg3[%c29] : memref<98xf32, #tpu.memory_space<smem>>
      %c78 = arith.constant 78 : index
      %384 = memref.load %arg3[%c78] : memref<98xf32, #tpu.memory_space<smem>>
      %385 = vector.extract_strided_slice %370 {offsets = [0, 1], sizes = [1, 256], strides = [1, 1]} : vector<1x262xf32> to vector<1x256xf32>
      %386 = vector.broadcast %383 : f32 to vector<1x256xf32>
      %387 = arith.mulf %385, %386 : vector<1x256xf32>
      %388 = vector.extract_strided_slice %372 {offsets = [0, 1], sizes = [1, 256], strides = [1, 1]} : vector<1x262xf32> to vector<1x256xf32>
      %389 = vector.broadcast %384 : f32 to vector<1x256xf32>
      %390 = arith.mulf %388, %389 : vector<1x256xf32>
      %391 = arith.addf %387, %390 : vector<1x256xf32>
      %392 = arith.mulf %391, %38 : vector<1x256xf32>
      %393 = arith.addf %382, %392 : vector<1x256xf32>
      %c30 = arith.constant 30 : index
      %394 = memref.load %arg3[%c30] : memref<98xf32, #tpu.memory_space<smem>>
      %c79 = arith.constant 79 : index
      %395 = memref.load %arg3[%c79] : memref<98xf32, #tpu.memory_space<smem>>
      %396 = vector.extract_strided_slice %370 {offsets = [0, 2], sizes = [1, 256], strides = [1, 1]} : vector<1x262xf32> to vector<1x256xf32>
      %397 = vector.broadcast %394 : f32 to vector<1x256xf32>
      %398 = arith.mulf %396, %397 : vector<1x256xf32>
      %399 = vector.extract_strided_slice %372 {offsets = [0, 2], sizes = [1, 256], strides = [1, 1]} : vector<1x262xf32> to vector<1x256xf32>
      %400 = vector.broadcast %395 : f32 to vector<1x256xf32>
      %401 = arith.mulf %399, %400 : vector<1x256xf32>
      %402 = arith.addf %398, %401 : vector<1x256xf32>
      %403 = arith.mulf %402, %40 : vector<1x256xf32>
      %404 = arith.addf %393, %403 : vector<1x256xf32>
      %c31 = arith.constant 31 : index
      %405 = memref.load %arg3[%c31] : memref<98xf32, #tpu.memory_space<smem>>
      %c80 = arith.constant 80 : index
      %406 = memref.load %arg3[%c80] : memref<98xf32, #tpu.memory_space<smem>>
      %407 = vector.extract_strided_slice %370 {offsets = [0, 3], sizes = [1, 256], strides = [1, 1]} : vector<1x262xf32> to vector<1x256xf32>
      %408 = vector.broadcast %405 : f32 to vector<1x256xf32>
      %409 = arith.mulf %407, %408 : vector<1x256xf32>
      %410 = vector.extract_strided_slice %372 {offsets = [0, 3], sizes = [1, 256], strides = [1, 1]} : vector<1x262xf32> to vector<1x256xf32>
      %411 = vector.broadcast %406 : f32 to vector<1x256xf32>
      %412 = arith.mulf %410, %411 : vector<1x256xf32>
      %413 = arith.addf %409, %412 : vector<1x256xf32>
      %414 = arith.mulf %413, %42 : vector<1x256xf32>
      %415 = arith.addf %404, %414 : vector<1x256xf32>
      %c32_81 = arith.constant 32 : index
      %416 = memref.load %arg3[%c32_81] : memref<98xf32, #tpu.memory_space<smem>>
      %c81 = arith.constant 81 : index
      %417 = memref.load %arg3[%c81] : memref<98xf32, #tpu.memory_space<smem>>
      %418 = vector.extract_strided_slice %370 {offsets = [0, 4], sizes = [1, 256], strides = [1, 1]} : vector<1x262xf32> to vector<1x256xf32>
      %419 = vector.broadcast %416 : f32 to vector<1x256xf32>
      %420 = arith.mulf %418, %419 : vector<1x256xf32>
      %421 = vector.extract_strided_slice %372 {offsets = [0, 4], sizes = [1, 256], strides = [1, 1]} : vector<1x262xf32> to vector<1x256xf32>
      %422 = vector.broadcast %417 : f32 to vector<1x256xf32>
      %423 = arith.mulf %421, %422 : vector<1x256xf32>
      %424 = arith.addf %420, %423 : vector<1x256xf32>
      %425 = arith.mulf %424, %44 : vector<1x256xf32>
      %426 = arith.addf %415, %425 : vector<1x256xf32>
      %c33 = arith.constant 33 : index
      %427 = memref.load %arg3[%c33] : memref<98xf32, #tpu.memory_space<smem>>
      %c82 = arith.constant 82 : index
      %428 = memref.load %arg3[%c82] : memref<98xf32, #tpu.memory_space<smem>>
      %429 = vector.extract_strided_slice %370 {offsets = [0, 5], sizes = [1, 256], strides = [1, 1]} : vector<1x262xf32> to vector<1x256xf32>
      %430 = vector.broadcast %427 : f32 to vector<1x256xf32>
      %431 = arith.mulf %429, %430 : vector<1x256xf32>
      %432 = vector.extract_strided_slice %372 {offsets = [0, 5], sizes = [1, 256], strides = [1, 1]} : vector<1x262xf32> to vector<1x256xf32>
      %433 = vector.broadcast %428 : f32 to vector<1x256xf32>
      %434 = arith.mulf %432, %433 : vector<1x256xf32>
      %435 = arith.addf %431, %434 : vector<1x256xf32>
      %436 = arith.mulf %435, %46 : vector<1x256xf32>
      %437 = arith.addf %426, %436 : vector<1x256xf32>
      %c34 = arith.constant 34 : index
      %438 = memref.load %arg3[%c34] : memref<98xf32, #tpu.memory_space<smem>>
      %c83 = arith.constant 83 : index
      %439 = memref.load %arg3[%c83] : memref<98xf32, #tpu.memory_space<smem>>
      %440 = vector.extract_strided_slice %370 {offsets = [0, 6], sizes = [1, 256], strides = [1, 1]} : vector<1x262xf32> to vector<1x256xf32>
      %441 = vector.broadcast %438 : f32 to vector<1x256xf32>
      %442 = arith.mulf %440, %441 : vector<1x256xf32>
      %443 = vector.extract_strided_slice %372 {offsets = [0, 6], sizes = [1, 256], strides = [1, 1]} : vector<1x262xf32> to vector<1x256xf32>
      %444 = vector.broadcast %439 : f32 to vector<1x256xf32>
      %445 = arith.mulf %443, %444 : vector<1x256xf32>
      %446 = arith.addf %442, %445 : vector<1x256xf32>
      %447 = arith.mulf %446, %48 : vector<1x256xf32>
      %448 = arith.addf %437, %447 : vector<1x256xf32>
      %c0_82 = arith.constant 0 : index
      %c0_83 = arith.constant 0 : index
      %c80_84 = arith.constant 80 : index
      %449 = vector.load %arg8[%c0_82, %c0_83, %c80_84] : memref<2x1x358xf32, #tpu.memory_space<vmem>>, vector<1x1x262xf32>
      %450 = vector.shape_cast %449 : vector<1x1x262xf32> to vector<1x262xf32>
      %c1_85 = arith.constant 1 : index
      %c0_86 = arith.constant 0 : index
      %c80_87 = arith.constant 80 : index
      %451 = vector.load %arg8[%c1_85, %c0_86, %c80_87] : memref<2x1x358xf32, #tpu.memory_space<vmem>>, vector<1x1x262xf32>
      %452 = vector.shape_cast %451 : vector<1x1x262xf32> to vector<1x262xf32>
      %c35 = arith.constant 35 : index
      %453 = memref.load %arg3[%c35] : memref<98xf32, #tpu.memory_space<smem>>
      %c84 = arith.constant 84 : index
      %454 = memref.load %arg3[%c84] : memref<98xf32, #tpu.memory_space<smem>>
      %455 = vector.extract_strided_slice %450 {offsets = [0, 0], sizes = [1, 256], strides = [1, 1]} : vector<1x262xf32> to vector<1x256xf32>
      %456 = vector.broadcast %453 : f32 to vector<1x256xf32>
      %457 = arith.mulf %455, %456 : vector<1x256xf32>
      %458 = vector.extract_strided_slice %452 {offsets = [0, 0], sizes = [1, 256], strides = [1, 1]} : vector<1x262xf32> to vector<1x256xf32>
      %459 = vector.broadcast %454 : f32 to vector<1x256xf32>
      %460 = arith.mulf %458, %459 : vector<1x256xf32>
      %461 = arith.addf %457, %460 : vector<1x256xf32>
      %462 = arith.mulf %461, %36 : vector<1x256xf32>
      %c36 = arith.constant 36 : index
      %463 = memref.load %arg3[%c36] : memref<98xf32, #tpu.memory_space<smem>>
      %c85 = arith.constant 85 : index
      %464 = memref.load %arg3[%c85] : memref<98xf32, #tpu.memory_space<smem>>
      %465 = vector.extract_strided_slice %450 {offsets = [0, 1], sizes = [1, 256], strides = [1, 1]} : vector<1x262xf32> to vector<1x256xf32>
      %466 = vector.broadcast %463 : f32 to vector<1x256xf32>
      %467 = arith.mulf %465, %466 : vector<1x256xf32>
      %468 = vector.extract_strided_slice %452 {offsets = [0, 1], sizes = [1, 256], strides = [1, 1]} : vector<1x262xf32> to vector<1x256xf32>
      %469 = vector.broadcast %464 : f32 to vector<1x256xf32>
      %470 = arith.mulf %468, %469 : vector<1x256xf32>
      %471 = arith.addf %467, %470 : vector<1x256xf32>
      %472 = arith.mulf %471, %38 : vector<1x256xf32>
      %473 = arith.addf %462, %472 : vector<1x256xf32>
      %c37 = arith.constant 37 : index
      %474 = memref.load %arg3[%c37] : memref<98xf32, #tpu.memory_space<smem>>
      %c86 = arith.constant 86 : index
      %475 = memref.load %arg3[%c86] : memref<98xf32, #tpu.memory_space<smem>>
      %476 = vector.extract_strided_slice %450 {offsets = [0, 2], sizes = [1, 256], strides = [1, 1]} : vector<1x262xf32> to vector<1x256xf32>
      %477 = vector.broadcast %474 : f32 to vector<1x256xf32>
      %478 = arith.mulf %476, %477 : vector<1x256xf32>
      %479 = vector.extract_strided_slice %452 {offsets = [0, 2], sizes = [1, 256], strides = [1, 1]} : vector<1x262xf32> to vector<1x256xf32>
      %480 = vector.broadcast %475 : f32 to vector<1x256xf32>
      %481 = arith.mulf %479, %480 : vector<1x256xf32>
      %482 = arith.addf %478, %481 : vector<1x256xf32>
      %483 = arith.mulf %482, %40 : vector<1x256xf32>
      %484 = arith.addf %473, %483 : vector<1x256xf32>
      %c38 = arith.constant 38 : index
      %485 = memref.load %arg3[%c38] : memref<98xf32, #tpu.memory_space<smem>>
      %c87 = arith.constant 87 : index
      %486 = memref.load %arg3[%c87] : memref<98xf32, #tpu.memory_space<smem>>
      %487 = vector.extract_strided_slice %450 {offsets = [0, 3], sizes = [1, 256], strides = [1, 1]} : vector<1x262xf32> to vector<1x256xf32>
      %488 = vector.broadcast %485 : f32 to vector<1x256xf32>
      %489 = arith.mulf %487, %488 : vector<1x256xf32>
      %490 = vector.extract_strided_slice %452 {offsets = [0, 3], sizes = [1, 256], strides = [1, 1]} : vector<1x262xf32> to vector<1x256xf32>
      %491 = vector.broadcast %486 : f32 to vector<1x256xf32>
      %492 = arith.mulf %490, %491 : vector<1x256xf32>
      %493 = arith.addf %489, %492 : vector<1x256xf32>
      %494 = arith.mulf %493, %42 : vector<1x256xf32>
      %495 = arith.addf %484, %494 : vector<1x256xf32>
      %c39 = arith.constant 39 : index
      %496 = memref.load %arg3[%c39] : memref<98xf32, #tpu.memory_space<smem>>
      %c88 = arith.constant 88 : index
      %497 = memref.load %arg3[%c88] : memref<98xf32, #tpu.memory_space<smem>>
      %498 = vector.extract_strided_slice %450 {offsets = [0, 4], sizes = [1, 256], strides = [1, 1]} : vector<1x262xf32> to vector<1x256xf32>
      %499 = vector.broadcast %496 : f32 to vector<1x256xf32>
      %500 = arith.mulf %498, %499 : vector<1x256xf32>
      %501 = vector.extract_strided_slice %452 {offsets = [0, 4], sizes = [1, 256], strides = [1, 1]} : vector<1x262xf32> to vector<1x256xf32>
      %502 = vector.broadcast %497 : f32 to vector<1x256xf32>
      %503 = arith.mulf %501, %502 : vector<1x256xf32>
      %504 = arith.addf %500, %503 : vector<1x256xf32>
      %505 = arith.mulf %504, %44 : vector<1x256xf32>
      %506 = arith.addf %495, %505 : vector<1x256xf32>
      %c40 = arith.constant 40 : index
      %507 = memref.load %arg3[%c40] : memref<98xf32, #tpu.memory_space<smem>>
      %c89 = arith.constant 89 : index
      %508 = memref.load %arg3[%c89] : memref<98xf32, #tpu.memory_space<smem>>
      %509 = vector.extract_strided_slice %450 {offsets = [0, 5], sizes = [1, 256], strides = [1, 1]} : vector<1x262xf32> to vector<1x256xf32>
      %510 = vector.broadcast %507 : f32 to vector<1x256xf32>
      %511 = arith.mulf %509, %510 : vector<1x256xf32>
      %512 = vector.extract_strided_slice %452 {offsets = [0, 5], sizes = [1, 256], strides = [1, 1]} : vector<1x262xf32> to vector<1x256xf32>
      %513 = vector.broadcast %508 : f32 to vector<1x256xf32>
      %514 = arith.mulf %512, %513 : vector<1x256xf32>
      %515 = arith.addf %511, %514 : vector<1x256xf32>
      %516 = arith.mulf %515, %46 : vector<1x256xf32>
      %517 = arith.addf %506, %516 : vector<1x256xf32>
      %c41 = arith.constant 41 : index
      %518 = memref.load %arg3[%c41] : memref<98xf32, #tpu.memory_space<smem>>
      %c90 = arith.constant 90 : index
      %519 = memref.load %arg3[%c90] : memref<98xf32, #tpu.memory_space<smem>>
      %520 = vector.extract_strided_slice %450 {offsets = [0, 6], sizes = [1, 256], strides = [1, 1]} : vector<1x262xf32> to vector<1x256xf32>
      %521 = vector.broadcast %518 : f32 to vector<1x256xf32>
      %522 = arith.mulf %520, %521 : vector<1x256xf32>
      %523 = vector.extract_strided_slice %452 {offsets = [0, 6], sizes = [1, 256], strides = [1, 1]} : vector<1x262xf32> to vector<1x256xf32>
      %524 = vector.broadcast %519 : f32 to vector<1x256xf32>
      %525 = arith.mulf %523, %524 : vector<1x256xf32>
      %526 = arith.addf %522, %525 : vector<1x256xf32>
      %527 = arith.mulf %526, %48 : vector<1x256xf32>
      %528 = arith.addf %517, %527 : vector<1x256xf32>
      %c0_88 = arith.constant 0 : index
      %c0_89 = arith.constant 0 : index
      %c96 = arith.constant 96 : index
      %529 = vector.load %arg8[%c0_88, %c0_89, %c96] : memref<2x1x358xf32, #tpu.memory_space<vmem>>, vector<1x1x262xf32>
      %530 = vector.shape_cast %529 : vector<1x1x262xf32> to vector<1x262xf32>
      %c1_90 = arith.constant 1 : index
      %c0_91 = arith.constant 0 : index
      %c96_92 = arith.constant 96 : index
      %531 = vector.load %arg8[%c1_90, %c0_91, %c96_92] : memref<2x1x358xf32, #tpu.memory_space<vmem>>, vector<1x1x262xf32>
      %532 = vector.shape_cast %531 : vector<1x1x262xf32> to vector<1x262xf32>
      %c42 = arith.constant 42 : index
      %533 = memref.load %arg3[%c42] : memref<98xf32, #tpu.memory_space<smem>>
      %c91 = arith.constant 91 : index
      %534 = memref.load %arg3[%c91] : memref<98xf32, #tpu.memory_space<smem>>
      %535 = vector.extract_strided_slice %530 {offsets = [0, 0], sizes = [1, 256], strides = [1, 1]} : vector<1x262xf32> to vector<1x256xf32>
      %536 = vector.broadcast %533 : f32 to vector<1x256xf32>
      %537 = arith.mulf %535, %536 : vector<1x256xf32>
      %538 = vector.extract_strided_slice %532 {offsets = [0, 0], sizes = [1, 256], strides = [1, 1]} : vector<1x262xf32> to vector<1x256xf32>
      %539 = vector.broadcast %534 : f32 to vector<1x256xf32>
      %540 = arith.mulf %538, %539 : vector<1x256xf32>
      %541 = arith.addf %537, %540 : vector<1x256xf32>
      %542 = arith.mulf %541, %36 : vector<1x256xf32>
      %c43 = arith.constant 43 : index
      %543 = memref.load %arg3[%c43] : memref<98xf32, #tpu.memory_space<smem>>
      %c92 = arith.constant 92 : index
      %544 = memref.load %arg3[%c92] : memref<98xf32, #tpu.memory_space<smem>>
      %545 = vector.extract_strided_slice %530 {offsets = [0, 1], sizes = [1, 256], strides = [1, 1]} : vector<1x262xf32> to vector<1x256xf32>
      %546 = vector.broadcast %543 : f32 to vector<1x256xf32>
      %547 = arith.mulf %545, %546 : vector<1x256xf32>
      %548 = vector.extract_strided_slice %532 {offsets = [0, 1], sizes = [1, 256], strides = [1, 1]} : vector<1x262xf32> to vector<1x256xf32>
      %549 = vector.broadcast %544 : f32 to vector<1x256xf32>
      %550 = arith.mulf %548, %549 : vector<1x256xf32>
      %551 = arith.addf %547, %550 : vector<1x256xf32>
      %552 = arith.mulf %551, %38 : vector<1x256xf32>
      %553 = arith.addf %542, %552 : vector<1x256xf32>
      %c44 = arith.constant 44 : index
      %554 = memref.load %arg3[%c44] : memref<98xf32, #tpu.memory_space<smem>>
      %c93 = arith.constant 93 : index
      %555 = memref.load %arg3[%c93] : memref<98xf32, #tpu.memory_space<smem>>
      %556 = vector.extract_strided_slice %530 {offsets = [0, 2], sizes = [1, 256], strides = [1, 1]} : vector<1x262xf32> to vector<1x256xf32>
      %557 = vector.broadcast %554 : f32 to vector<1x256xf32>
      %558 = arith.mulf %556, %557 : vector<1x256xf32>
      %559 = vector.extract_strided_slice %532 {offsets = [0, 2], sizes = [1, 256], strides = [1, 1]} : vector<1x262xf32> to vector<1x256xf32>
      %560 = vector.broadcast %555 : f32 to vector<1x256xf32>
      %561 = arith.mulf %559, %560 : vector<1x256xf32>
      %562 = arith.addf %558, %561 : vector<1x256xf32>
      %563 = arith.mulf %562, %40 : vector<1x256xf32>
      %564 = arith.addf %553, %563 : vector<1x256xf32>
      %c45 = arith.constant 45 : index
      %565 = memref.load %arg3[%c45] : memref<98xf32, #tpu.memory_space<smem>>
      %c94 = arith.constant 94 : index
      %566 = memref.load %arg3[%c94] : memref<98xf32, #tpu.memory_space<smem>>
      %567 = vector.extract_strided_slice %530 {offsets = [0, 3], sizes = [1, 256], strides = [1, 1]} : vector<1x262xf32> to vector<1x256xf32>
      %568 = vector.broadcast %565 : f32 to vector<1x256xf32>
      %569 = arith.mulf %567, %568 : vector<1x256xf32>
      %570 = vector.extract_strided_slice %532 {offsets = [0, 3], sizes = [1, 256], strides = [1, 1]} : vector<1x262xf32> to vector<1x256xf32>
      %571 = vector.broadcast %566 : f32 to vector<1x256xf32>
      %572 = arith.mulf %570, %571 : vector<1x256xf32>
      %573 = arith.addf %569, %572 : vector<1x256xf32>
      %574 = arith.mulf %573, %42 : vector<1x256xf32>
      %575 = arith.addf %564, %574 : vector<1x256xf32>
      %c46 = arith.constant 46 : index
      %576 = memref.load %arg3[%c46] : memref<98xf32, #tpu.memory_space<smem>>
      %c95 = arith.constant 95 : index
      %577 = memref.load %arg3[%c95] : memref<98xf32, #tpu.memory_space<smem>>
      %578 = vector.extract_strided_slice %530 {offsets = [0, 4], sizes = [1, 256], strides = [1, 1]} : vector<1x262xf32> to vector<1x256xf32>
      %579 = vector.broadcast %576 : f32 to vector<1x256xf32>
      %580 = arith.mulf %578, %579 : vector<1x256xf32>
      %581 = vector.extract_strided_slice %532 {offsets = [0, 4], sizes = [1, 256], strides = [1, 1]} : vector<1x262xf32> to vector<1x256xf32>
      %582 = vector.broadcast %577 : f32 to vector<1x256xf32>
      %583 = arith.mulf %581, %582 : vector<1x256xf32>
      %584 = arith.addf %580, %583 : vector<1x256xf32>
      %585 = arith.mulf %584, %44 : vector<1x256xf32>
      %586 = arith.addf %575, %585 : vector<1x256xf32>
      %c47 = arith.constant 47 : index
      %587 = memref.load %arg3[%c47] : memref<98xf32, #tpu.memory_space<smem>>
      %c96_93 = arith.constant 96 : index
      %588 = memref.load %arg3[%c96_93] : memref<98xf32, #tpu.memory_space<smem>>
      %589 = vector.extract_strided_slice %530 {offsets = [0, 5], sizes = [1, 256], strides = [1, 1]} : vector<1x262xf32> to vector<1x256xf32>
      %590 = vector.broadcast %587 : f32 to vector<1x256xf32>
      %591 = arith.mulf %589, %590 : vector<1x256xf32>
      %592 = vector.extract_strided_slice %532 {offsets = [0, 5], sizes = [1, 256], strides = [1, 1]} : vector<1x262xf32> to vector<1x256xf32>
      %593 = vector.broadcast %588 : f32 to vector<1x256xf32>
      %594 = arith.mulf %592, %593 : vector<1x256xf32>
      %595 = arith.addf %591, %594 : vector<1x256xf32>
      %596 = arith.mulf %595, %46 : vector<1x256xf32>
      %597 = arith.addf %586, %596 : vector<1x256xf32>
      %c48_94 = arith.constant 48 : index
      %598 = memref.load %arg3[%c48_94] : memref<98xf32, #tpu.memory_space<smem>>
      %c97 = arith.constant 97 : index
      %599 = memref.load %arg3[%c97] : memref<98xf32, #tpu.memory_space<smem>>
      %600 = vector.extract_strided_slice %530 {offsets = [0, 6], sizes = [1, 256], strides = [1, 1]} : vector<1x262xf32> to vector<1x256xf32>
      %601 = vector.broadcast %598 : f32 to vector<1x256xf32>
      %602 = arith.mulf %600, %601 : vector<1x256xf32>
      %603 = vector.extract_strided_slice %532 {offsets = [0, 6], sizes = [1, 256], strides = [1, 1]} : vector<1x262xf32> to vector<1x256xf32>
      %604 = vector.broadcast %599 : f32 to vector<1x256xf32>
      %605 = arith.mulf %603, %604 : vector<1x256xf32>
      %606 = arith.addf %602, %605 : vector<1x256xf32>
      %607 = arith.mulf %606, %48 : vector<1x256xf32>
      %608 = arith.addf %597, %607 : vector<1x256xf32>
      %609 = arith.addf %128, %208 : vector<1x256xf32>
      %610 = arith.addf %288, %368 : vector<1x256xf32>
      %611 = arith.addf %448, %528 : vector<1x256xf32>
      %612 = arith.addf %609, %610 : vector<1x256xf32>
      %613 = arith.addf %611, %608 : vector<1x256xf32>
      %614 = arith.addf %612, %613 : vector<1x256xf32>
      %615 = arith.negf %614 : vector<1x256xf32>
      %616 = math.exp %615 : vector<1x256xf32>
      %cst_95 = arith.constant 1.000000e+00 : f32
      %617 = vector.broadcast %cst_95 : f32 to vector<1x256xf32>
      %618 = arith.addf %617, %616 : vector<1x256xf32>
      %619 = arith.divf %617, %618 : vector<1x256xf32>
      %c0_96 = arith.constant 0 : index
      %c0_97 = arith.constant 0 : index
      %c0_98 = arith.constant 0 : index
      %620 = vector.load %arg5[%c0_96, %c0_97, %c0_98] : memref<1x1x256xf32, #tpu.memory_space<vmem>>, vector<1x1x256xf32>
      %621 = vector.shape_cast %620 : vector<1x1x256xf32> to vector<1x256xf32>
      %622 = vector.shape_cast %619 : vector<1x256xf32> to vector<1x1x256xf32>
      tpu.vector_store %arg5[%c0_96, %c0_97, %c0_98], %622 {strides = array<i32>} : memref<1x1x256xf32, #tpu.memory_space<vmem>>, vector<1x1x256xf32>,
    } else {
    }
    return
  }
  func.func @transform_0(%arg0: i32, %arg1: i32) -> (i32, i32, i32) {
    %c0_i32 = arith.constant 0 : i32
    %c0_i32_0 = arith.constant 0 : i32
    return %arg0, %arg1, %c0_i32 : i32, i32, i32
  }
  func.func @transform_1(%arg0: i32, %arg1: i32) -> i32 {
    %c0_i32 = arith.constant 0 : i32
    %c0_i32_0 = arith.constant 0 : i32
    return %c0_i32 : i32
  }
  func.func @transform_2(%arg0: i32, %arg1: i32) -> (i32, i32, i32) {
    %c0_i32 = arith.constant 0 : i32
    %c0_i32_0 = arith.constant 0 : i32
    %c0_i32_1 = arith.constant 0 : i32
    %c0_i32_2 = arith.constant 0 : i32
    return %c0_i32, %c0_i32_0, %c0_i32_1 : i32, i32, i32
  }
  func.func @transform_3(%arg0: i32, %arg1: i32) -> (i32, i32, i32) {
    %c0_i32 = arith.constant 0 : i32
    %c0_i32_0 = arith.constant 0 : i32
    %c0_i32_1 = arith.constant 0 : i32
    return %arg0, %c0_i32, %c0_i32_0 : i32, i32, i32
  }
}

</mosaic_0001>

<bundles_post_ra>
// kernel: tpu_custom_call.1
= control target key start
LH: loop header
LB: loop body
LE: loop exit
PB: predicated region body
PF: predicated region fallthrough
CT: control target
= control target key end

     0   :  { %s3354_s0 = inlined_call_operand.hbm [shape: f32[2,4,256], index: 0, kind: input, shape index: {}]   ;;  %s3355_s1 = inlined_call_operand.vmem [shape: f32[98], index: 1, kind: input, shape index: {}]   ;;  %s3356_s2 = inlined_call_operand.hbm [shape: f32[7,1,256], index: 2, kind: input, shape index: {}]   ;;  %s3357_s3 = inlined_call_operand.hbm [shape: f32[2,1,256], index: 3, kind: output, shape index: {}]  }
   0x1   :  { %3461 = sst [smem:[#allocation103_spill]] %s3354_s0 }
   0x2   :  { %3462 = sst [smem:[#allocation104_spill]] %s3355_s1 }
   0x3   :  { %3463 = sst [smem:[#allocation105_spill]] %s3356_s2 }
   0x4   :  { %3464 = sst [smem:[#allocation106_spill]] %s3357_s3 }
   0x5   :  { %8 = vsyncpa [#allocation6], 0 }
   0x6   :  { %10 = vsyncpa [#allocation6 + $0x1], 0 }
   0x7   :  { %11 = vsyncpa [#allocation8], 0 }
   0x8   :  { %12 = vsyncpa [#allocation11], 0 }
   0x9   :  { %13 = vsyncpa [#allocation7], 0 }
   0xa   :  { %15 = vsyncpa [#allocation7 + $0x1], 0  ;;  %s2089_s12 = smov 0   ;;  %s2091_s13 = smov 0  }
   0xb   :  { %s2093_s14 = smov 0   ;;  %s2095_s15 = smov 0  }
   0xc   :  { %s2097_s16 = smov 0   ;;  %s2099_s17 = smov 0  }
   0xd LB: > { %3465 = sst [smem:[#allocation17_spill]] %s1984_s12  ;;  %s1568_s18 = sadd.s32 4294967295, %s2004_s17   ;;  %s2004_s17 = sphi %s2099_s17, %s21_s17   ;;  %s2000_s16 = sphi %s2097_s16, %s3771_s16   ;;  %s1996_s15 = sphi %s2095_s15, %s3770_s15   ;;  %s1992_s14 = sphi %s2093_s14, %s3769_s14   ;;  %s1988_s13 = sphi %s2091_s13, %s3768_s13   ;;  %s1984_s12 = sphi %s2089_s12, %s3767_s12  }
   0xe   : > { %3466 = sst [smem:[#allocation18_spill]] %s1988_s13  ;;  %s1569_s19 = sadd.s32 4294967294, %s2004_s17  }
   0xf   : > { %3467 = sst [smem:[#allocation19_spill]] %s1992_s14  ;;  %p55_p0 = scmp.ne.s32.totalorder %s1988_s13, %s1984_s12 }
  0x10   : > { %3468 = sst [smem:[#allocation20_spill]] %s1996_s15  ;;  %p2123_p1 = scmp.eq.s32.totalorder %s1568_s18, 0 }
  0x11   : > { %3469 = sst [smem:[#allocation21_spill]] %s2000_s16  ;;  %p2127_p2 = scmp.eq.s32.totalorder %s1568_s18, 1 }
  0x12   : > { %3470 = sst [smem:[#allocation22_spill]] %s2004_s17  ;;  %p127_p3 = scmp.eq.s32.totalorder %s1569_s19, 1 }
  0x13   : > { %s3471_s20 = scalar_select %p2123_p1, 1, 0 }
  0x14   : > { %p2133_p4 = por %p2123_p1, %p55_p0  ;;  %p1570_p5 = scmp.ge.s32.totalorder %s2004_s17, 1 }
  0x15   : > { %p2138_p6 = por %p127_p3, %p55_p0  ;;  %p134_p7 = scmp.lt.s32.totalorder %s2004_s17, 3 }
  0x16   : > { %s3473_s22 = scalar_select %p2133_p4, 1, 0 }
  0x17   : > { %s3474_s23 = scalar_select %p2138_p6, 1, 0 }
  0x18   : > { %s3476_s1 = sld [smem:[#allocation104_spill]]  ;;  %p2146_p8 = pnand %p1570_p5, %p134_p7 }
  0x19   : > { %3475 = sst [smem:[#allocation23_spill]] %s3474_s23  ;;  %s2006_s28 = smov [#allocation10]  }
  0x1a   : > { %p1699_p10 = pneg %p2146_p8  ;;  %s157_s29 = sshll.u32 %s2006_s28, 4  ;;  %s2159_s29 = int_to_ptr.vmem [resolvable:$true] %s157_s29 }
  0x1c   : > { %p2155_p11 = pnand %p1699_p10, %p2123_p1 }
  0x1e   : > { %s147_s26 = sshll.u32 %s3476_s1, 4  ;;  %p1843_p13 = pneg %p2155_p11  ;;  %s148_s26 = int_to_ptr.vmem [resolvable:$true] %s147_s26 }
  0x1f   : > { %s1841_s4 = scalar_lea.vmem %s148_s26, 16  ;;  %p1849_p5 = scmp.lt.s32.totalorder %s148_s26, %s148_s26 }
  0x20   : > { %p1842_p12 = scmp.ne.s32.totalorder %s148_s26, %s1841_s4  ;;  %p1850_p7 = scmp.lt.s32.totalorder %s1841_s4, %s1841_s4 }
  0x22   : > { %p1844_p0 = pnand %p1843_p13, %p1842_p12  ;;  %p1851_p9 = por %p1850_p7, %p1849_p5 }
  0x24   : > { %p1845_p3 = pneg %p1844_p0 }
  0x26   : > { %p1852_p6 = pnand %p1851_p9, %p1845_p3 }
  0x28   : > { %1855 = shalt.err (!%p1852_p6)
}
  0x29   : > { %s2007_s5 = smov [#allocation9]   ;;  %s3479_s2 = sld [smem:[#allocation105_spill]] }
  0x2a   : > { %1702 = dma.vmem_to_smem (!%p2155_p11), %s148_s26, 16, %s2007_s5, [#allocation8]  }
  0x2f   : > { %s1856_s8 = scalar_lea.hbm %s3479_s2, 224 }
  0x30   : > { %p1857_p10 = scmp.ne.s32.totalorder %s3479_s2, %s1856_s8  ;;  %p1863_p6 = scmp.lt.u32.totalorder %s1856_s8, %s3479_s2 }
  0x32   : > { %p1859_p12 = pnand %p1857_p10, %p1843_p13 }
  0x34   : > { %p1860_p0 = pneg %p1859_p12 }
  0x36   : > { %p1865_p9 = pnand %p1863_p6, %p1860_p0 }
  0x38   : > { %1868 = shalt.err (!%p1865_p9)
}
  0x39   : > { %s1869_s19 = scalar_lea.vmem %s2159_s29, 224  ;;  %p1877_p1 = scmp.lt.s32.totalorder %s2159_s29, %s2159_s29 }
  0x3a   : > { %p1870_p3 = scmp.ne.s32.totalorder %s2159_s29, %s1869_s19  ;;  %p1878_p10 = scmp.lt.s32.totalorder %s1869_s19, %s1869_s19 }
  0x3c   : > { %p1872_p5 = pnand %p1870_p3, %p1843_p13  ;;  %p1879_p12 = por %p1878_p10, %p1877_p1 }
  0x3e   : > { %p1873_p7 = pneg %p1872_p5 }
  0x40   : > { %p1880_p4 = pnand %p1879_p12, %p1873_p7 }
  0x42   : > { %1883 = shalt.err (!%p1880_p4)
}
  0x43   : > { %s2008_s24 = smov 32   ;;  %s2009_s25 = smov 2  }
  0x44   : > { %1705 = dma.hbm_to_vmem [thread:$0]  (!%p2155_p11), %s3479_s2, 224, %s2159_s29, [#allocation11], %s2008_s24, %s2008_s24, %s2009_s25  }
  0x45   : > { %s33_s4 = sadd.s32 1, %s2000_s16  ;;  %s42_s5 = sadd.s32 1, %s1992_s14 }
  0x46   : > { %p35_p1 = scmp.ge.s32.totalorder %s33_s4, 2  ;;  %p49_p4 = scmp.ne.s32.totalorder %s1992_s14, %s1988_s13 }
  0x47   : > { %p50_p13 = scmp.eq.s32.totalorder %s2004_s17, 0  ;;  %p1716_p0 = scmp.lt.s32.totalorder %s2004_s17, 2 }
  0x48   : > { %s3773_s4 = smov (%p35_p1, %s33_s4), 0  ;;  %p2203_p9 = por %p2127_p2, %p49_p4 }
  0x49   : > { %3480 = sst [smem:[#allocation24_spill]] %s3773_s4  ;;  %p51_p6 = por %p50_p13, %p49_p4 }
  0x4a   : > { %s3481_s6 = scalar_select %p2203_p9, 1, 0 }
  0x4b   : > { %s37_s30 = ssub.s32 %s2000_s16, %s3773_s4  ;;  %s171_s7 = sand.u32 1, %s1992_s14  }
  0x4c   : > { %3482 = sst [smem:[#allocation25_spill]] %s3481_s6  ;;  %p40_p3 = scmp.eq.s32.totalorder %s37_s30, 0 }
  0x4d   : > { %s1574_s29 = sshll.u32 %s171_s7, 3  ;;  %s1685_s8 = sshll.u32 %s2000_s16, 7 }
  0x4e   : > { %s2212_s9 = scalar_select %p40_p3, %s1992_s14, %s42_s5  }
  0x4f   : > { %s3484_s0 = sld [smem:[#allocation103_spill]]  ;;  %s175_s21 = scalar_lea.vmem [#allocation5], %s1574_s29 }
  0x50   : > { %3483 = sst [smem:[#allocation26_spill]] %s2212_s9  ;;  %s185_s19 = sshll.u32 %s175_s21, 4  ;;  %s2225_s19 = int_to_ptr.vmem [resolvable:$true] %s185_s19 }
  0x51   : > { %p2221_p2 = pnand %p1716_p0, %p51_p6  ;;  %s172_s25 = scalar_lea.sflag [#allocation6], %s171_s7 }
  0x53   : > { %p1886_p5 = pneg %p2221_p2 }
  0x55   : > { %s2217_s18 = scalar_lea.hbm %s3484_s0, %s1685_s8  ;;  %s1889_s30 = scalar_lea.hbm %s3484_s0, 256 }
  0x56   : > { %s1884_s26 = scalar_lea.hbm %s2217_s18, 128  ;;  %p1890_p12 = scmp.lt.u32.totalorder %s2217_s18, %s3484_s0 }
  0x57   : > { %p1885_p11 = scmp.ne.s32.totalorder %s2217_s18, %s1884_s26  ;;  %p1891_p1 = scmp.lt.u32.totalorder %s1889_s30, %s1884_s26 }
  0x58   : > { %p1893_p13 = scmp.lt.u32.totalorder %s1884_s26, %s2217_s18 }
  0x59   : > { %p1887_p7 = pnand %p1886_p5, %p1885_p11  ;;  %p1892_p4 = por %p1891_p1, %p1890_p12 }
  0x5b   : > { %p1888_p10 = pneg %p1887_p7  ;;  %p1894_p0 = por %p1893_p13, %p1892_p4 }
  0x5d   : > { %p1895_p6 = pnand %p1894_p0, %p1888_p10 }
  0x5f   : > { %1898 = shalt.err (!%p1895_p6)
}
  0x60   : > { %s1899_s7 = scalar_lea.vmem %s2225_s19, 128  ;;  %s2010_s10 = smov [#allocation5]  }
  0x61   : > { %p1900_p3 = scmp.ne.s32.totalorder %s2225_s19, %s1899_s7  ;;  %s1904_s11 = sshll.u32 %s2010_s10, 4  ;;  %s1905_s11 = int_to_ptr.vmem [resolvable:$false] %s1904_s11 }
  0x62   : > { %s1906_s21 = scalar_lea.vmem %s1905_s11, 256  ;;  %p1907_p9 = scmp.lt.s32.totalorder %s2225_s19, %s1905_s11 }
  0x63   : > { %p1902_p11 = pnand %p1900_p3, %p1886_p5  ;;  %p1908_p12 = scmp.lt.s32.totalorder %s1906_s21, %s1899_s7 }
  0x65   : > { %p1903_p7 = pneg %p1902_p11  ;;  %p1909_p1 = por %p1908_p12, %p1907_p9 }
  0x67   : > { %p1910_p4 = pnand %p1909_p1, %p1903_p7 }
  0x69   : > { %1913 = shalt.err (!%p1910_p4)
}
  0x6a   : > { %1709 = dma.hbm_to_vmem [thread:$0]  (!%p2221_p2), %s2217_s18, 128, %s2225_s19, %s172_s25  }
  0x6b   : > { %194 = sbr.rel (%p2146_p8) target bundleno = 745 (0x2e9), region = 32 }
  0x72   : > { %s2255_s26 = sand.u32 1, %s1988_s13   ;;  %p3487_p9 = scmp.ne.s32.totalorder %s3473_s22, 0 }
  0x73   : > { %3486 = sst [smem:[#allocation27_spill]] %s2255_s26  ;;  %s1578_s28 = sshll.u32 %s2255_s26, 3 }
  0x74   : > { %s197_s5 = scalar_lea.sflag [#allocation6], %s2255_s26  ;;  %s200_s30 = scalar_lea.vmem [#allocation5], %s1578_s28 }
  0x75   : > { %1967 = dma.done.wait (%p3487_p9), %s197_s5, 128  }
  0x76   : > { %1969 = vsyncadd (%p3487_p9), %s197_s5, 4294967168  ;;  %p3488_p5 = scmp.ne.s32.totalorder %s3471_s20, 0 }
  0x78   : > { %1971 = dma.done.wait (%p3488_p5), [#allocation8], 16  }
  0x79   : > { %1973 = vsyncadd (%p3488_p5), [#allocation8], 4294967280 }
  0x7a   : > { %1975 = dma.done.wait (%p3488_p5), [#allocation11], 224  }
  0x7b   : > { %1977 = vsyncadd (%p3488_p5), [#allocation11], 4294967072 }
  0x7c   : > { %213 = sfence }
  0x7d   : > { %v2271_v0 = vld [vmem:[#allocation10 + $0x2] sm:$0x3]  ;;  %v2273_v1 = vld [vmem:[#allocation10 + $0x4] sm:$0x3]  ;;  %s2011_s27 = smov 49   ;;  %s2012_s22 = smov 50   ;;  %v275_v13 = vlaneseq }
  0x7e   : > { %860 = vrot.lane.b32.xlu1 %v2271_v0, %s2011_s27  ;;  %881 = vrot.lane.b32.xlu0 %v2273_v1, %s2012_s22  ;;  %v232_v2 = vld [vmem:[%s200_s30] sm:$0xff]  ;;  %vm236_vm0 = vcmask 1043456   ;;  %s2013_s18 = smov 81   ;;  %s2014_s20 = smov 97   ;;  %v2279_v9 = vld [vmem:[#allocation10 + $0x6] sm:$0x3] }
  0x7f   : > { %v234_v3 = vcombine.high %v232_v2, %v232_v2  ;;  %v251_v4 = vsel %vm236_vm0, %v232_v2, -inf  ;;  %v237_v7 = vsel %vm236_vm0, %v232_v2, 0.0  ;;  %v2015_v17 = vmov 1966171168   ;;  %s2016_s19 = smov 82   ;;  %s2017_s24 = smov 83  }
  0x80   : > { %v252_v5 = vrot.slane %v251_v4, 4  ;;  %v238_v12 = vrot.slane %v237_v7, 4  ;;  %v273_v18 = vunpack.c.l.s4 %v2015_v17  ;;  %v2283_v21 = vld [vmem:[#allocation10 + $0x8] sm:$0x3]  ;;  %v276_v25 = vshrl.u32 %v275_v13, 7  ;;  %s2018_s25 = smov 51  }
  0x81   : > { %v258_v6 = vsel %vm236_vm0, %v234_v3, -inf  ;;  %v244_v8 = vsel %vm236_vm0, %v234_v3, 0.0  ;;  %s2019_s29 = smov 52   ;;  %s2020_s8 = smov 98   ;;  %v2290_v39 = vld [vmem:[#allocation10 + $0xa] sm:$0x3] }
  0x82   : > { %1139 = vrot.lane.b32.xlu1 %v2271_v0, %s2013_s18  ;;  %1279 = vrot.lane.b32.xlu0 %v2271_v0, %s2014_s20  ;;  %v253_v10 = vmax.f32 %v251_v4, %v252_v5  ;;  %v259_v11 = vrot.slane %v258_v6, 4  ;;  %v245_v14 = vrot.slane %v244_v8, 4  ;;  %v239_v19 = vadd.f32 %v238_v12, %v237_v7  ;;  %s2021_s7 = smov 99   ;;  %s2023_s10 = smov 84   ;;  %v409_v51 = vld [vmem:[#allocation10 + $0xc] sm:$0x3] }
  0x83   : > { %v274_v29 = vunpack.c.0.s8 %v273_v18  ;;  %vm370_vm1 = vcmp.lt.s32.totalorder %v275_v13, 51  ;;  %vm2292_vm2 = vcmp.ge.s32.totalorder %v275_v13, 51  ;;  %v2022_v44 = vmov 0.0   ;;  %s2024_s11 = smov 85   ;;  %s2025_s21 = smov 53  }
  0x84   : > { %v254_v15 = vrot.slane %v253_v10, 2  ;;  %v260_v16 = vmax.f32 %v258_v6, %v259_v11  ;;  %v246_v20 = vadd.f32 %v245_v14, %v244_v8  ;;  %v240_v24 = vrot.slane %v239_v19, 2  ;;  %374 = vst.msk [vmem:[#allocation4 + $0x3] sm:$0x1] %vm370_vm1, %v2022_v44  ;;  %372 = vst.msk [vmem:[#allocation4] sm:$0x1] %vm370_vm1, %v2022_v44 }
  0x85   : > { %v277_v37 = vsub.s32 %v274_v29, %v276_v25  ;;  %vm376_vm3 = vcmp.lt.s32.totalorder %v275_v13, 102  ;;  %vm2296_vm4 = vcmp.lt.s32.totalorder %v275_v13, 307  ;;  %vm2304_vm6 = vcmp.lt.s32.totalorder %v275_v13, 256  ;;  %s2026_s28 = smov 100   ;;  %s2027_s5 = smov 86  }
  0x86   : > { %1160 = vrot.lane.b32.xlu1 %v2273_v1, %s2016_s19  ;;  %1181 = vrot.lane.b32.xlu0 %v2279_v9, %s2017_s24  ;;  %v255_v22 = vmax.f32 %v253_v10, %v254_v15  ;;  %v261_v23 = vrot.slane %v260_v16, 2  ;;  %v247_v26 = vrot.slane %v246_v20, 2  ;;  %v241_v30 = vadd.f32 %v240_v24, %v239_v19  ;;  %vm377_vm5 = vmand %vm2292_vm2, %vm376_vm3  ;;  %s2028_s30 = smov 102   ;;  %s2029_s27 = smov 54   ;;  %v2325_v55 = vld [vmem:[#allocation10] sm:$0x3] }
  0x87   : > { %379 = vst.msk [vmem:[#allocation4 + $0x5] sm:$0x1] %vm377_vm5, %v2022_v44  ;;  %vm388_vm7 = vmand %vm2292_vm2, %vm2296_vm4  ;;  %s2030_s22 = smov 33   ;;  %s2031_s18 = smov 101   ;;  %vm384_vm8 = vcmask 416768   ;;  %vm863_vm9 = vcmask 400384  }
  0x88   : > { %v256_v27 = vrot.slane %v255_v22, 1  ;;  %v262_v28 = vmax.f32 %v260_v16, %v261_v23  ;;  %v248_v31 = vadd.f32 %v247_v26, %v246_v20  ;;  %v242_v34 = vrot.slane %v241_v30, 1  ;;  %378 = vst.msk [vmem:[#allocation4 + $0x2] sm:$0x1] %vm377_vm5, %v2022_v44  ;;  %s2032_s20 = smov 65   ;;  %s2033_s19 = smov 17  }
  0x89   : > { %s2034_s24 = smov 18   ;;  %s2378_s0 = sld [smem:[#allocation9 + $0x2c]]  ;;  %vm884_vm10 = vcmask 408576   ;;  %vm1142_vm11 = vcmask 662528   ;;  %vm1282_vm12 = vcmask 793600   ;;  %vm1163_vm13 = vcmask 670720  }
  0x8a   : > { %902 = vrot.lane.b32.xlu1 %v2279_v9, %s2018_s25  ;;  %922 = vrot.lane.b32.xlu0 %v2283_v21, %s2019_s29  ;;  %v257_v32 = vmax.f32 %v255_v22, %v256_v27  ;;  %v263_v33 = vrot.slane %v262_v28, 1  ;;  %v249_v35 = vrot.slane %v248_v31, 1  ;;  %v243_v38 = vadd.f32 %v242_v34, %v241_v30  ;;  %s2036_s29 = smov 19   ;;  %s2382_s1 = sld [smem:[#allocation9 + $0x5d]] }
  0x8b   : > { %s2384_s2 = sld [smem:[#allocation9 + $0x2d]]  ;;  %s2386_s4 = sld [smem:[#allocation9 + $0x5e]]  ;;  %vm1184_vm14 = vcmask 678912   ;;  %vm925_vm15 = vcmask 424960   ;;  %vm1303_vm0 = vcmask 801792   ;;  %vm1324_vm1 = vcmask 809984  }
  0x8c   : > { %v264_v36 = vmax.f32 %v262_v28, %v263_v33  ;;  %v250_v40 = vadd.f32 %v249_v35, %v248_v31  ;;  %s2388_s16 = sld [smem:[#allocation9 + $0x27]]  ;;  %s2390_s9 = sld [smem:[#allocation9 + $0x58]]  ;;  %vm1205_vm2 = vcmask 687104   ;;  %vm1226_vm3 = vcmask 695296  }
  0x8d   : > { %s2392_s14 = sld [smem:[#allocation9 + $0x28]]  ;;  %s2394_s13 = sld [smem:[#allocation9 + $0x59]]  ;;  %vm1345_vm4 = vcmask 818176   ;;  %vm1247_vm5 = vcmask 703488  }
  0x8e   : > { %1300 = vrot.lane.b32.xlu1 %v2273_v1, %s2020_s8  ;;  %1321 = vrot.lane.b32.xlu0 %v2279_v9, %s2021_s7  ;;  %v294_v41 = vcombine.low %v257_v32, %v264_v36  ;;  %v271_v43 = vcombine.low %v243_v38, %v250_v40  ;;  %s2037_s8 = smov 80   ;;  %s2038_s7 = smov 20  }
  0x8f   : > { %3511 = sst [smem:[#allocation44_spill]] %s2378_s0  ;;  %s2396_s17 = sld [smem:[#allocation9 + $0x1a]]  ;;  %v1295_v18 = vstv %s2378_s0 }
  0x90   : > { %v301_v46 = vrot.slane %v294_v41, %v277_v37  ;;  %v278_v48 = vrot.slane %v271_v43, %v277_v37  ;;  %3512 = sst [smem:[#allocation45_spill]] %s2382_s1  ;;  %s2400_s23 = sld [smem:[#allocation9 + $0x4b]]  ;;  %v1297_v19 = vstv %s2382_s1 }
  0x91   : > { %3513 = sst [smem:[#allocation46_spill]] %s2384_s2  ;;  %s2402_s12 = sld [smem:[#allocation9 + $0x2e]]  ;;  %v1318_v22 = vstv %s2386_s4 }
  0x92   : > { %1202 = vrot.lane.b32.xlu1 %v2283_v21, %s2023_s10  ;;  %1223 = vrot.lane.b32.xlu0 %v2290_v39, %s2024_s11  ;;  %v308_v49 = vrot.slane %v301_v46, %v277_v37  ;;  %v285_v50 = vrot.slane %v278_v48, %v277_v37  ;;  %s2039_s10 = smov 34   ;;  %s2040_s11 = smov 21  }
  0x93   : > { %3514 = sst [smem:[#allocation47_spill]] %s2386_s4  ;;  %s2404_s3 = sld [smem:[#allocation9 + $0x5f]] }
  0x94   : > { %310 = vst.msk [vmem:[#allocation3] sm:$0x3] %vm2304_vm6, %v308_v49  ;;  %291 = vst.msk [vmem:[#allocation2] sm:$0x3] %vm2304_vm6, %v285_v50  ;;  %3515 = sst [smem:[#allocation48_spill]] %s2388_s16  ;;  %s2406_s6 = sld [smem:[#allocation9 + $0x29]] }
  0x95   : > { %3516 = sst [smem:[#allocation49_spill]] %s2390_s9  ;;  %s2410_s15 = sld [smem:[#allocation9 + $0x5a]] }
  0x96   : > { %943 = vrot.lane.b32.xlu1 %v2290_v39, %s2025_s21  ;;  %s2041_s21 = smov 66   ;;  %3517 = sst [smem:[#allocation50_spill]] %s2392_s14 }
  0x97   : > { %3518 = sst [smem:[#allocation51_spill]] %s2394_s13  ;;  %s2412_s26 = sld [smem:[#allocation9 + $0x30]] }
  0x98   : > { %3519 = sst [smem:[#allocation52_spill]] %s2396_s17  ;;  %s2414_s14 = sld [smem:[#allocation9 + $0x61]] }
  0x99   : > { %3520 = sst [smem:[#allocation53_spill]] %s2400_s23  ;;  %s2416_s13 = sld [smem:[#allocation9 + $0x1b]] }
  0x9a   : > { %1342 = vrot.lane.b32.xlu1 %v2283_v21, %s2026_s28  ;;  %s2042_s28 = smov 22   ;;  %3521 = sst [smem:[#allocation54_spill]] %s2402_s12 }
  0x9b   : > { %v367_v52 = vld [vmem:[#allocation3] sm:$0x3]  ;;  %v364_v53 = vld [vmem:[#allocation2] sm:$0x3]  ;;  %3522 = sst [smem:[#allocation55_spill]] %s2404_s3  ;;  %s2418_s17 = sld [smem:[#allocation9 + $0x4c]] }
  0x9c   : > { %391 = vrot.lane.b32.xlu0 %v367_v52, %s2018_s25  ;;  %v366_v54 = vmul.f32 0.25, %v364_v53  ;;  %3523 = sst [smem:[#allocation56_spill]] %s2406_s6  ;;  %s2420_s9 = sld [smem:[#allocation9 + $0x40]] }
  0x9d   : > { %3524 = sst [smem:[#allocation57_spill]] %s2410_s15  ;;  %s2422_s23 = sld [smem:[#allocation9 + $0xf]] }
  0x9e   : > { %1244 = vrot.lane.b32.xlu1 %v409_v51, %s2027_s5  ;;  %s3362_s5 = smov 96   ;;  %3525 = sst [smem:[#allocation58_spill]] %s2412_s26 }
  0x9f   : > { %3526 = sst [smem:[#allocation59_spill]] %s2414_s14  ;;  %s2424_s12 = sld [smem:[#allocation9 + $0x60]] }
  0xa0   : > { %381 = vrot.lane.b32.xlu0 %v366_v54, %s2018_s25  ;;  %s2035_s25 = smov 48   ;;  %3527 = sst [smem:[#allocation60_spill]] %s2416_s13 }
  0xa1   : > { %3528 = sst [smem:[#allocation61_spill]] %s2418_s17  ;;  %s2428_s6 = sld [smem:[#allocation9 + $0x4e]] }
  0xa2   : > { %1384 = vrot.lane.b32.xlu1 %v409_v51, %s2028_s30  ;;  %s2044_s30 = smov 35   ;;  %3529 = sst [smem:[#allocation62_spill]] %s2420_s9 }
  0xa3   : > { %3530 = sst [smem:[#allocation63_spill]] %s2422_s23  ;;  %s2430_s3 = sld [smem:[#allocation9 + $0x39]] }
  0xa4   : > { %964 = vrot.lane.b32.xlu0 %v409_v51, %s2029_s27  ;;  %s2045_s27 = smov 67   ;;  %s2432_s15 = sld [smem:[#allocation9 + $0x2f]] }
  0xa5   : > { %3531 = sst [smem:[#allocation64_spill]] %s2424_s12  ;;  %s2434_s26 = sld [smem:[#allocation9 + $0x3a]] }
  0xa6   : > { %720 = vrot.lane.b32.xlu1 %v2271_v0, %s2030_s22  ;;  %s2046_s22 = smov 36   ;;  %s2438_s13 = sld [smem:[#allocation9 + $0x1d]] }
  0xa7   : > { %3532 = sst [smem:[#allocation65_spill]] %s2428_s6  ;;  %s2442_s9 = sld [smem:[#allocation9 + $0x9]] }
  0xa8   : > { %1363 = vrot.lane.b32.xlu0 %v2290_v39, %s2031_s18  ;;  %s2047_s18 = smov 68   ;;  %s2440_s17 = sld [smem:[#allocation9 + $0x8]] }
  0xa9   : > { %3533 = sst [smem:[#allocation66_spill]] %s2430_s3  ;;  %s2444_s12 = sld [smem:[#allocation9 + $0x46]] }
  0xaa   : > { %999 = vrot.lane.b32.xlu1 %v2271_v0, %s2032_s20  ;;  %s2048_s20 = smov 37   ;;  %3534 = sst [smem:[#allocation67_spill]] %s2432_s15 }
  0xab   : > { %3535 = sst [smem:[#allocation68_spill]] %s2434_s26  ;;  %s2448_s3 = sld [smem:[#allocation9 + $0x54]] }
  0xac   : > { %580 = vrot.lane.b32.xlu0 %v2271_v0, %s2033_s19  ;;  %s2049_s19 = smov 69   ;;  %3536 = sst [smem:[#allocation69_spill]] %s2438_s13 }
  0xad   : > { %3538 = sst [smem:[#allocation71_spill]] %s2442_s9  ;;  %s2446_s23 = sld [smem:[#allocation9 + $0x3b]] }
  0xae   : > { %601 = vrot.lane.b32.xlu1 %v2273_v1, %s2034_s24  ;;  %s2050_s24 = smov 38   ;;  %3537 = sst [smem:[#allocation70_spill]] %s2440_s17 }
  0xaf   : > { %3539 = sst [smem:[#allocation72_spill]] %s2444_s12  ;;  %s2450_s6 = sld [smem:[#allocation9 + $0x15]] }
  0xb0   : > { %846 = vrot.lane.b32.xlu0 %v2325_v55, %s2035_s25  ;;  %s2051_s25 = smov 70   ;;  %s2452_s26 = sld [smem:[#allocation9 + $0xa]] }
  0xb1   : > { %3541 = sst [smem:[#allocation74_spill]] %s2448_s3  ;;  %s2456_s13 = sld [smem:[#allocation9 + $0x23]] }
  0xb2   : > { %622 = vrot.lane.b32.xlu1 %v2279_v9, %s2036_s29  ;;  %s2342_s29 = sld [smem:[#allocation9 + $0x16]]  ;;  %s2458_s9 = sld [smem:[#allocation9 + $0x41]] }
  0xb3   : > { %3540 = sst [smem:[#allocation73_spill]] %s2446_s23  ;;  %s2460_s12 = sld [smem:[#allocation9 + $0x3d]] }
  0xb4   : > { %1125 = vrot.lane.b32.xlu0 %v2325_v55, %s2037_s8  ;;  %s2344_s8 = sld [smem:[#allocation9 + $0x47]]  ;;  %s2466_s3 = sld [smem:[#allocation9 + $0x10]] }
  0xb5   : > { %3542 = sst [smem:[#allocation75_spill]] %s2450_s6  ;;  %s2462_s23 = sld [smem:[#allocation9 + $0x4f]] }
  0xb6   : > { %643 = vrot.lane.b32.xlu1 %v2283_v21, %s2038_s7  ;;  %s2346_s7 = sld [smem:[#allocation9 + $0x17]]  ;;  %3543 = sst [smem:[#allocation76_spill]] %s2452_s26 }
  0xb7   : > { %3544 = sst [smem:[#allocation77_spill]] %s2456_s13  ;;  %s2468_s26 = sld [smem:[#allocation9 + $0x3e]] }
  0xb8   : > { %741 = vrot.lane.b32.xlu0 %v2273_v1, %s2039_s10  ;;  %3495 = sst [smem:[#allocation28_spill]] %s2342_s29  ;;  %s2348_s10 = sld [smem:[#allocation9 + $0x48]] }
  0xb9   : > { %3545 = sst [smem:[#allocation78_spill]] %s2458_s9  ;;  %s2470_s6 = sld [smem:[#allocation9 + $0xc]] }
  0xba   : > { %664 = vrot.lane.b32.xlu1 %v2290_v39, %s2040_s11  ;;  %3496 = sst [smem:[#allocation29_spill]] %s2344_s8  ;;  %s2472_s13 = sld [smem:[#allocation9 + $0x5b]]  ;;  %v857_v2 = vstv %s2344_s8 }
  0xbb   : > { %s2350_s11 = sld [smem:[#allocation9 + $0x24]]  ;;  %3546 = sst [smem:[#allocation79_spill]] %s2460_s12 }
  0xbc   : > { %1020 = vrot.lane.b32.xlu0 %v2273_v1, %s2041_s21  ;;  %3497 = sst [smem:[#allocation30_spill]] %s2346_s7  ;;  %v855_v1 = vstv %s2342_s29  ;;  %v876_v3 = vstv %s2346_s7  ;;  %s2479_s12 = sld [smem:[#allocation9 + $0x42]] }
  0xbd   : > { %s2352_s21 = sld [smem:[#allocation9 + $0x55]]  ;;  %3547 = sst [smem:[#allocation80_spill]] %s2462_s23 }
  0xbe   : > { %685 = vrot.lane.b32.xlu1 %v409_v51, %s2042_s28  ;;  %3498 = sst [smem:[#allocation31_spill]] %s2348_s10  ;;  %s2354_s28 = sld [smem:[#allocation9 + $0x2b]]  ;;  %v878_v4 = vstv %s2348_s10 }
  0xbf   : > { %3548 = sst [smem:[#allocation81_spill]] %s2466_s3  ;;  %s2477_s23 = sld [smem:[#allocation9 + $0x1e]] }
  0xc0   : > { %1265 = vrot.lane.b32.xlu0 %v2325_v55, %s3362_s5  ;;  %s2376_s5 = sld [smem:[#allocation9 + $0x4a]]  ;;  %3549 = sst [smem:[#allocation82_spill]] %s2468_s26 }
  0xc1   : > { %3499 = sst [smem:[#allocation32_spill]] %s2350_s11  ;;  %v1134_v5 = vstv %s2350_s11  ;;  %s2487_s29 = sld [smem:[#allocation9 + $0x2a]] }
  0xc2   : > { %3550 = sst [smem:[#allocation83_spill]] %s2470_s6  ;;  %s2485_s6 = sld [smem:[#allocation9 + $0xd]] }
  0xc3   : > { %3500 = sst [smem:[#allocation33_spill]] %s2352_s21  ;;  %v1136_v6 = vstv %s2352_s21  ;;  %s2495_s10 = sld [smem:[#allocation9 + $0x11]] }
  0xc4   : > { %762 = vrot.lane.b32.xlu0 %v2279_v9, %s2044_s30  ;;  %3501 = sst [smem:[#allocation34_spill]] %s2354_s28  ;;  %s2358_s30 = sld [smem:[#allocation9 + $0x5c]]  ;;  %v1274_v7 = vstv %s2354_s28 }
  0xc5   : > { %3551 = sst [smem:[#allocation84_spill]] %s2472_s13  ;;  %s3565_s8 = sld [smem:[#allocation54_spill]] }
  0xc6   : > { %3510 = sst [smem:[#allocation43_spill]] %s2376_s5  ;;  %s2497_s7 = sld [smem:[#allocation9 + $0x43]]  ;;  %v919_v17 = vstv %s2376_s5 }
  0xc7   : > { %3552 = sst [smem:[#allocation85_spill]] %s2477_s23  ;;  %s2523_s5 = sld [smem:[#allocation9 + $0x53]] }
  0xc8   : > { %1041 = vrot.lane.b32.xlu0 %v2279_v9, %s2045_s27  ;;  %s2360_s27 = sld [smem:[#allocation9 + $0x25]]  ;;  %3554 = sst [smem:[#allocation87_spill]] %s2485_s6 }
  0xc9   : > { %3553 = sst [smem:[#allocation86_spill]] %s2479_s12  ;;  %s3574_s0 = sld [smem:[#allocation63_spill]] }
  0xca   : > { %3502 = sst [smem:[#allocation35_spill]] %s2358_s30  ;;  %v1276_v8 = vstv %s2358_s30  ;;  %s3575_s4 = sld [smem:[#allocation62_spill]] }
  0xcb   : > { %3555 = sst [smem:[#allocation88_spill]] %s2487_s29  ;;  %s2503_s30 = sld [smem:[#allocation9 + $0x12]]  ;;  %v1337_v29 = vstv %s3565_s8 }
  0xcc   : > { %783 = vrot.lane.b32.xlu0 %v2283_v21, %s2046_s22  ;;  %s2362_s22 = sld [smem:[#allocation9 + $0x56]]  ;;  %3556 = sst [smem:[#allocation89_spill]] %s2495_s10 }
  0xcd   : > { %3557 = sst [smem:[#allocation90_spill]] %s2497_s7  ;;  %s3566_s7 = sld [smem:[#allocation55_spill]] }
  0xce   : > { %3503 = sst [smem:[#allocation36_spill]] %s2360_s27  ;;  %v1155_v9 = vstv %s2360_s27  ;;  %s2531_s16 = sld [smem:[#allocation9 + $0x38]] }
  0xcf   : > { %3571 = sst [smem:[#allocation94_spill]] %s2523_s5  ;;  %s2536_s21 = sld [smem:[#allocation9 + $0x14]]  ;;  %v715_v40 = vstv %s3574_s0 }
  0xd0   : > { %1062 = vrot.lane.b32.xlu0 %v2283_v21, %s2047_s18  ;;  %s2364_s18 = sld [smem:[#allocation9 + $0x26]]  ;;  %v1316_v21 = vstv %s2384_s2  ;;  %s2538_s5 = sld [smem:[#allocation9 + $0x22]]  ;;  %v717_v41 = vstv %s3575_s4 }
  0xd1   : > { %3561 = sst [smem:[#allocation91_spill]] %s2503_s30  ;;  %s2521_s30 = sld [smem:[#allocation9 + $0x13]] }
  0xd2   : > { %3504 = sst [smem:[#allocation37_spill]] %s2362_s22  ;;  %v1157_v10 = vstv %s2362_s22  ;;  %s2544_s8 = sld [smem:[#allocation9 + $0x7]] }
  0xd3   : > { %s2505_s22 = sld [smem:[#allocation9 + $0x44]]  ;;  %v1339_v31 = vstv %s3566_s7  ;;  %s2552_s7 = sld [smem:[#allocation9 + $0x32]] }
  0xd4   : > { %804 = vrot.lane.b32.xlu0 %v2290_v39, %s2048_s20  ;;  %s2366_s20 = sld [smem:[#allocation9 + $0x57]]  ;;  %3576 = sst [smem:[#allocation95_spill]] %s2531_s16 }
  0xd5   : > { %s2546_s16 = sld [smem:[#allocation9 + $0x4d]]  ;;  %s3587_s14 = sld [smem:[#allocation75_spill]] }
  0xd6   : > { %3505 = sst [smem:[#allocation38_spill]] %s2364_s18  ;;  %v1176_v11 = vstv %s2364_s18  ;;  %s3564_s18 = sld [smem:[#allocation53_spill]] }
  0xd7   : > { %s3588_s2 = sld [smem:[#allocation72_spill]]  ;;  %s2567_s4 = sld [smem:[#allocation9 + $0x1c]] }
  0xd8   : > { %1083 = vrot.lane.b32.xlu0 %v2290_v39, %s2049_s19  ;;  %s2368_s19 = sld [smem:[#allocation9 + $0x18]]  ;;  %3581 = sst [smem:[#allocation96_spill]] %s2544_s8 }
  0xd9   : > { %3563 = sst [smem:[#allocation92_spill]] %s2505_s22  ;;  %s2554_s22 = sld [smem:[#allocation9 + $0x3f]] }
  0xda   : > { %3506 = sst [smem:[#allocation39_spill]] %s2366_s20  ;;  %s2513_s20 = sld [smem:[#allocation9 + $0x52]] }
  0xdb   : > { %3582 = sst [smem:[#allocation97_spill]] %s2546_s16  ;;  %s2574_s16 = sld [smem:[#allocation9 + $0x33]] }
  0xdc   : > { %825 = vrot.lane.b32.xlu0 %v409_v51, %s2050_s24  ;;  %s2370_s24 = sld [smem:[#allocation9 + $0x49]]  ;;  %v940_v28 = vstv %s3564_s18  ;;  %s2576_s8 = sld [smem:[#allocation9 + $0x34]] }
  0xdd   : > { %3585 = sst [smem:[#allocation98_spill]] %s2552_s7  ;;  %s3594_s15 = sld [smem:[#allocation79_spill]] }
  0xde   : > { %3507 = sst [smem:[#allocation40_spill]] %s2368_s19  ;;  %v897_v14 = vstv %s2368_s19  ;;  %s2515_s19 = sld [smem:[#allocation9 + $0x45]] }
  0xdf   : > { %3586 = sst [smem:[#allocation99_spill]] %s2554_s22  ;;  %s3592_s22 = sld [smem:[#allocation77_spill]] }
  0xe0   : > { %1104 = vrot.lane.b32.xlu0 %v409_v51, %s2051_s25  ;;  %s2372_s25 = sld [smem:[#allocation9 + $0x19]]  ;;  %s2582_s18 = sld [smem:[#allocation9 + $0xe]] }
  0xe1   : > { %s2569_s7 = sld [smem:[#allocation9 + $0x1]]  ;;  %s3597_s27 = sld [smem:[#allocation83_spill]] }
  0xe2   : > { %3508 = sst [smem:[#allocation41_spill]] %s2370_s24  ;;  %v899_v15 = vstv %s2370_s24  ;;  %s2605_s11 = sld [smem:[#allocation9 + $0x3]] }
  0xe3   : > { %s3569_s24 = sld [smem:[#allocation57_spill]]  ;;  %s2607_s17 = sld [smem:[#allocation9 + $0x37]] }
  0xe4   : > { %3567 = sst [smem:[#allocation93_spill]] %s2515_s19  ;;  %s2529_s19 = sld [smem:[#allocation9 + $0x21]] }
  0xe5   : > { %v1120_v53 = vstv %s3592_s22  ;;  %s3602_s9 = sld [smem:[#allocation91_spill]]  ;;  %s2615_s3 = sld [smem:[#allocation9 + $0x31]] }
  0xe6   : > { %3509 = sst [smem:[#allocation42_spill]] %s2372_s25  ;;  %s3568_s25 = sld [smem:[#allocation56_spill]] }
  0xe7   : > { %3593 = sst [smem:[#allocation75_spill]] %s2569_s7  ;;  %s2584_s7 = sld [smem:[#allocation9 + $0x35]] }
  0xe8   : > { %3596 = sst [smem:[#allocation79_spill]] %s2582_s18  ;;  %s3607_s28 = sld [smem:[#allocation94_spill]] }
  0xe9   : > { %v1241_v34 = vstv %s3569_s24  ;;  %s2590_s24 = sld [smem:[#allocation9 + $0x2]]  ;;  %3601 = sst [smem:[#allocation101_spill]] %s2607_s17 }
  0xea   : > { %s2623_s23 = sld [smem:[#allocation9 + $0x5]]  ;;  %s3610_s12 = sld [smem:[#allocation96_spill]] }
  0xeb   : > { %3606 = sst [smem:[#allocation102_spill]] %s2615_s3  ;;  %s3611_s13 = sld [smem:[#allocation97_spill]] }
  0xec   : > { %v1239_v33 = vstv %s3568_s25  ;;  %s2592_s25 = sld [smem:[#allocation9 + $0x36]]  ;;  %s3613_s29 = sld [smem:[#allocation75_spill]] }
  0xed   : > { %3598 = sst [smem:[#allocation83_spill]] %s2584_s7  ;;  %s2629_s6 = sld [smem:[#allocation9 + $0x6]] }
  0xee   : > { %s3614_s10 = sld [smem:[#allocation98_spill]]  ;;  %s2637_s0 = sld [smem:[#allocation9]] }
  0xef   : > { %s3455_s17 = smov 127   ;;  %s3635_s3 = smov 127  }
  0xf0   : > { %v2356_v56 = vpop.permute.xlu0 %881  ;;  %v2380_v58 = vpop.permute.xlu1 %860  ;;  %3609 = sst [smem:[#allocation94_spill]] %s2623_s23  ;;  %s3645_s7 = sld [smem:[#allocation39_spill]] }
  0xf1   : > { %v862_v43 = vrot.slane %v2380_v58, 7  ;;  %v883_v25 = vrot.slane %v2356_v56, 7  ;;  %s3650_s1 = sld [smem:[#allocation59_spill]]  ;;  %s3654_s23 = sld [smem:[#allocation78_spill]] }
  0xf2   : > { %3599 = sst [smem:[#allocation100_spill]] %s2592_s25  ;;  %s3652_s25 = sld [smem:[#allocation81_spill]] }
  0xf3   : > { %3612 = sst [smem:[#allocation96_spill]] %s2629_s6  ;;  %v864_v49 = vsel %vm863_vm9, %v862_v43, %v2380_v58  ;;  %v885_v48 = vsel %vm884_vm10, %v883_v25, %v2356_v56  ;;  %vm1128_vm9 = vcmask 654336   ;;  %vm946_vm10 = vcmask 433152   ;;  %s2054_s6 = smov 125  }
  0xf4   : > { %v2374_v57 = vpop.permute.xlu0 %1279  ;;  %v2408_v60 = vpop.permute.xlu1 %1139  ;;  %3616 = sst [smem:[#allocation97_spill]] %s2637_s0  ;;  %s3647_s0 = sld [smem:[#allocation74_spill]] }
  0xf5   : > { %v1141_v24 = vrot.slane %v2408_v60, 7  ;;  %s3655_s18 = sld [smem:[#allocation52_spill]]  ;;  %s3661_s22 = sld [smem:[#allocation50_spill]] }
  0xf6   : > { %s2055_s26 = smov 124  }
  0xf8   : > { %v2398_v59 = vpop.permute.xlu0 %1181  ;;  %v2436_v62 = vpop.permute.xlu1 %1160 }
  0xf9   : > { %v1162_v27 = vrot.slane %v2436_v62, 7 }
  0xfb   : > { %v2707_v56 = vsel %vm1163_vm13, %v1162_v27, %v2436_v62  ;;  %vm1366_vm13 = vcmask 826368  }
  0xfc   : > { %v2426_v61 = vpop.permute.xlu0 %922  ;;  %v2464_v0 = vpop.permute.xlu1 %902 }
  0xfd   : > { %v904_v35 = vrot.slane %v2464_v0, 7  ;;  %v924_v13 = vrot.slane %v2426_v61, 7 }
  0xff   : > { %v2725_v62 = vsel %vm925_vm15, %v924_v13, %v2426_v61  ;;  %vm1002_vm15 = vcmask 531456  }
 0x100   : > { %v2454_v63 = vpop.permute.xlu0 %1321  ;;  %v2510_v20 = vpop.permute.xlu1 %1300 }
 0x104   : > { %v2493_v12 = vpop.permute.xlu0 %1223  ;;  %v2556_v44 = vpop.permute.xlu1 %1202 }
 0x108   : > { %v2617_v38 = vpop.permute.xlu1 %943 }
 0x10c   : > { %v2655_v23 = vpop.permute.xlu1 %1342 }
 0x10d   : > { %v1344_v13 = vrot.slane %v2655_v23, 7 }
 0x10e   : > { %v392_v30 = vpop.permute.xlu0 %391 }
 0x10f   : > { %v393_v32 = vrot.slane %v392_v30, 7 }
 0x110   : > { %v1245_v43 = vpop.permute.xlu1 %1244 }
 0x111   : > { %v394_v39 = vsel %vm384_vm8, %v393_v32, %v392_v30  ;;  %v841_v32 = vstv %s3587_s14  ;;  %s3648_s14 = sld [smem:[#allocation42_spill]] }
 0x112   : > { %396 = vst.msk [vmem:[#allocation4 + $0x3] sm:$0x7] %vm388_vm7, %v394_v39  ;;  %v382_v46 = vpop.permute.xlu0 %381  ;;  %v843_v39 = vstv %s3588_s2  ;;  %s2613_s2 = sld [smem:[#allocation9 + $0x4]] }
 0x113   : > { %v383_v52 = vrot.slane %v382_v46, 7 }
 0x115   : > { %v385_v30 = vsel %vm384_vm8, %v383_v52, %v382_v46  ;;  %v1281_v52 = vrot.slane %v2374_v57, 7 }
 0x116   : > { %389 = vst.msk [vmem:[#allocation4] sm:$0x7] %vm388_vm7, %v385_v30  ;;  %v2599_v51 = vpop.permute.xlu0 %964  ;;  %v1183_v30 = vrot.slane %v2398_v59, 7  ;;  %vm1387_vm7 = vcmask 834560  }
 0x118   : > { %3605 = sst [smem:[#allocation91_spill]] %s2613_s2  ;;  %v2714_v25 = vsel %vm1184_vm14, %v1183_v30, %v2398_v59  ;;  %s3646_s2 = sld [smem:[#allocation58_spill]]  ;;  %vm583_vm14 = vcmask 138240  }
 0x119   : > { %v2647_v54 = vld [vmem:[#allocation4 + $0x3] sm:$0x7] }
 0x11a   : > { %v2631_v26 = vpop.permute.xlu0 %1363  ;;  %v1137_v58 = vmul.f32 %v1136_v6, %v2647_v54  ;;  %v1298_v59 = vmul.f32 %v1297_v19, %v2647_v54 }
 0x11d   : > { %v2649_v42 = vld [vmem:[#allocation4] sm:$0x7] }
 0x11e   : > { %v856_v50 = vmul.f32 %v855_v1, %v2649_v42  ;;  %v2660_v37 = vpop.permute.xlu0 %580  ;;  %v858_v1 = vmul.f32 %v857_v2, %v2647_v54  ;;  %v1275_v46 = vmul.f32 %v1274_v7, %v2649_v42  ;;  %v1135_v45 = vmul.f32 %v1134_v5, %v2649_v42 }
 0x11f   : > { %v1277_v7 = vmul.f32 %v1276_v8, %v2647_v54  ;;  %v1143_v5 = vsel %vm1142_vm11, %v1141_v24, %v2408_v60  ;;  %v1283_v8 = vsel %vm1282_vm12, %v1281_v52, %v2374_v57  ;;  %v1296_v60 = vmul.f32 %v1295_v18, %v2649_v42  ;;  %v1385_v52 = vpop.permute.xlu1 %1384 }
 0x120   : > { %v859_v2 = vadd.f32 %v858_v1, %v856_v50  ;;  %v1302_v50 = vrot.slane %v2510_v20, 7  ;;  %v877_v6 = vmul.f32 %v876_v3, %v2649_v42  ;;  %v1138_v1 = vadd.f32 %v1137_v58, %v1135_v45 }
 0x121   : > { %v1278_v24 = vadd.f32 %v1277_v7, %v1275_v46  ;;  %v2721_v57 = vsel %vm384_vm8, %v904_v35, %v2464_v0  ;;  %v1323_v18 = vrot.slane %v2454_v63, 7  ;;  %v1204_v3 = vrot.slane %v2556_v44, 7 }
 0x122   : > { %v2685_v36 = vpop.permute.xlu0 %846  ;;  %v866_v16 = vmul.f32 %v864_v49, %v859_v2  ;;  %v1304_v27 = vsel %vm1303_vm0, %v1302_v50, %v2510_v20  ;;  %v1225_v49 = vrot.slane %v2493_v12, 7  ;;  %v879_v0 = vmul.f32 %v878_v4, %v2647_v54 }
 0x123   : > { %v1317_v19 = vmul.f32 %v1316_v21, %v2649_v42  ;;  %v1299_v20 = vadd.f32 %v1298_v59, %v1296_v60  ;;  %v1285_v35 = vmul.f32 %v1283_v8, %v1278_v24  ;;  %vm849_vm8 = vcmask 392192  }
 0x124   : > { %868 = vrot.lane.b32.xlu1 %v866_v16, %s3455_s17  ;;  %v1246_v46 = vrot.slane %v1245_v43, 7  ;;  %v1156_v4 = vmul.f32 %v1155_v9, %v2649_v42  ;;  %v880_v45 = vadd.f32 %v879_v0, %v877_v6  ;;  %v1145_v30 = vmul.f32 %v1143_v5, %v1138_v1  ;;  %s2053_s17 = smov 126  }
 0x125   : > { %v1319_v16 = vmul.f32 %v1318_v22, %v2647_v54  ;;  %v1386_v2 = vrot.slane %v1385_v52, 7  ;;  %v716_v21 = vmul.f32 %v715_v40, %v2649_v42  ;;  %v718_v7 = vmul.f32 %v717_v41, %v2647_v54  ;;  %1287 = vrot.lane.b32.xlu0 %v1285_v35, %s3635_s3 }
 0x126   : > { %v2739_v61 = vpop.permute.xlu0 %1125  ;;  %v1325_v50 = vsel %vm1324_vm1, %v1323_v18, %v2454_v63  ;;  %v2762_v9 = vsel %vm1205_vm2, %v1204_v3, %v2556_v44  ;;  %v2766_v22 = vsel %vm1226_vm3, %v1225_v49, %v2493_v12  ;;  %v1158_v40 = vmul.f32 %v1157_v10, %v2647_v54 }
 0x127   : > { %v1338_v41 = vmul.f32 %v1337_v29, %v2649_v42  ;;  %v1320_v63 = vadd.f32 %v1319_v16, %v1317_v19  ;;  %v1306_v5 = vmul.f32 %v1304_v27, %v1299_v20  ;;  %v2775_v44 = vadd.f32 %v718_v7, %v716_v21 }
 0x128   : > { %1147 = vrot.lane.b32.xlu1 %v1145_v30, %s3635_s3  ;;  %v945_v58 = vrot.slane %v2617_v38, 7  ;;  %v898_v12 = vmul.f32 %v897_v14, %v2649_v42  ;;  %v1159_v8 = vadd.f32 %v1158_v40, %v1156_v4  ;;  %v887_v10 = vmul.f32 %v885_v48, %v880_v45 }
 0x129   : > { %v1346_v29 = vsel %vm1345_vm4, %v1344_v13, %v2655_v23  ;;  %v1340_v24 = vmul.f32 %v1339_v31, %v2647_v54  ;;  %v1248_v6 = vsel %vm1247_vm5, %v1246_v46, %v1245_v43  ;;  %v2790_v1 = vsel %vm1387_vm7, %v1386_v2, %v1385_v52  ;;  %1308 = vrot.lane.b32.xlu0 %v1306_v5, %s2053_s17 }
 0x12a   : > { %v2781_v60 = vpop.permute.xlu0 %741  ;;  %v900_v14 = vmul.f32 %v899_v15, %v2647_v54  ;;  %v920_v23 = vmul.f32 %v919_v17, %v2647_v54  ;;  %v1240_v31 = vmul.f32 %v1239_v33, %v2649_v42  ;;  %vm967_vm11 = vcmask 441344  }
 0x12b   : > { %v966_v48 = vrot.slane %v2599_v51, 7  ;;  %v1341_v43 = vadd.f32 %v1340_v24, %v1338_v41  ;;  %v1327_v18 = vmul.f32 %v1325_v50, %v1320_v63  ;;  %v842_v15 = vmul.f32 %v841_v32, %v2649_v42 }
 0x12c   : > { %889 = vrot.lane.b32.xlu1 %v887_v10, %s2053_s17  ;;  %v844_v17 = vmul.f32 %v843_v39, %v2647_v54  ;;  %v1177_v59 = vmul.f32 %v1176_v11, %v2649_v42  ;;  %v901_v33 = vadd.f32 %v900_v14, %v898_v12  ;;  %v1166_v27 = vmul.f32 %v2707_v56, %v1159_v8 }
 0x12d   : > { %v848_v3 = vrot.slane %v2685_v36, 7  ;;  %v941_v49 = vmul.f32 %v940_v28, %v2647_v54  ;;  %v1242_v0 = vmul.f32 %v1241_v34, %v2647_v54  ;;  %v1121_v32 = vmul.f32 %v1120_v53, %v2649_v42  ;;  %1329 = vrot.lane.b32.xlu0 %v1327_v18, %s2054_s6 }
 0x12e   : > { %v845_v13 = vadd.f32 %v844_v17, %v842_v15  ;;  %v3649_v11 = vstv %s3645_s7  ;;  %v3651_v56 = vstv %s3646_s2  ;;  %v3653_v34 = vstv %s3647_s0  ;;  %v2836_v35 = vpop.permute.xlu0 %1020  ;;  %s3656_s7 = sld [smem:[#allocation48_spill]]  ;;  %s3659_s2 = sld [smem:[#allocation49_spill]] }
 0x12f   : > { %v1179_v39 = vmul.f32 %v3649_v11, %v2647_v54  ;;  %v1380_v19 = vmul.f32 %v3651_v56, %v2649_v42  ;;  %v850_v28 = vsel %vm849_vm8, %v848_v3, %v2685_v36  ;;  %v1123_v20 = vmul.f32 %v3653_v34, %v2647_v54  ;;  %s3666_s0 = sld [smem:[#allocation87_spill]] }
 0x130   : > { %1168 = vrot.lane.b32.xlu1 %v1166_v27, %s2053_s17  ;;  %vm1268_vm12 = vcmask 785408   ;;  %v1243_v53 = vadd.f32 %v1242_v0, %v1240_v31  ;;  %v1348_v46 = vmul.f32 %v1346_v29, %v1341_v43  ;;  %v2839_v4 = vmul.f32 %v850_v28, %v845_v13  ;;  %v2864_v29 = vpop.permute.xlu1 %720 }
 0x131   : > { %v1127_v52 = vrot.slane %v2739_v61, 7  ;;  %v3657_v36 = vstv %s3648_s14  ;;  %v1180_v30 = vadd.f32 %v1179_v39, %v1177_v59  ;;  %v907_v16 = vmul.f32 %v2721_v57, %v901_v33  ;;  %s3667_s14 = sld [smem:[#allocation51_spill]] }
 0x132   : > { %v918_v45 = vmul.f32 %v3657_v36, %v2649_v42  ;;  %v1124_v2 = vadd.f32 %v1123_v20, %v1121_v32  ;;  %v3658_v21 = vstv %s3650_s1  ;;  %v3660_v40 = vstv %s3652_s25  ;;  %1350 = vrot.lane.b32.xlu0 %v1348_v46, %s2055_s26  ;;  %s3671_s1 = sld [smem:[#allocation82_spill]]  ;;  %v1266_v32 = vpop.permute.xlu0 %1265  ;;  %s3673_s25 = sld [smem:[#allocation84_spill]] }
 0x133   : > { %v1382_v7 = vmul.f32 %v3658_v21, %v2647_v54  ;;  %v1129_v50 = vsel %vm1128_vm9, %v1127_v52, %v2739_v61  ;;  %v737_v41 = vmul.f32 %v3660_v40, %v2649_v42  ;;  %v3662_v63 = vstv %s3654_s23  ;;  %s3675_s23 = sld [smem:[#allocation89_spill]] }
 0x134   : > { %v739_v5 = vmul.f32 %v3662_v63, %v2647_v54  ;;  %v3663_v57 = vstv %s3655_s18  ;;  %v3664_v8 = vstv %s3656_s7  ;;  %v2866_v24 = vmul.f32 %v1129_v50, %v1124_v2  ;;  %909 = vrot.lane.b32.xlu1 %v907_v16, %s2054_s6  ;;  %s3677_s18 = sld [smem:[#allocation60_spill]]  ;;  %s3678_s7 = sld [smem:[#allocation86_spill]] }
 0x135   : > { %v939_v12 = vmul.f32 %v3663_v57, %v2649_v42  ;;  %v1198_v10 = vmul.f32 %v3664_v8, %v2649_v42  ;;  %v3665_v61 = vstv %s3597_s27  ;;  %v1383_v31 = vadd.f32 %v1382_v7, %v1380_v19  ;;  %s3672_s27 = sld [smem:[#allocation88_spill]] }
 0x136   : > { %v660_v14 = vmul.f32 %v3665_v61, %v2649_v42  ;;  %v1250_v43 = vmul.f32 %v1248_v6, %v1243_v53  ;;  %v2872_v18 = vadd.f32 %v739_v5, %v737_v41  ;;  %v3668_v15 = vstv %s3594_s15  ;;  %s2056_s15 = smov 122  }
 0x137   : > { %v662_v17 = vmul.f32 %v3668_v15, %v2647_v54  ;;  %v3669_v59 = vstv %s3659_s2  ;;  %v3670_v27 = vstv %s3661_s22  ;;  %v921_v0 = vadd.f32 %v920_v23, %v918_v45  ;;  %s3680_s2 = sld [smem:[#allocation61_spill]]  ;;  %s3682_s22 = sld [smem:[#allocation67_spill]]  ;;  %v1000_v45 = vpop.permute.xlu1 %999 }
 0x138   : > { %v1200_v33 = vmul.f32 %v3669_v59, %v2647_v54  ;;  %v1219_v3 = vmul.f32 %v3670_v27, %v2649_v42  ;;  %v1187_v13 = vmul.f32 %v2714_v25, %v1180_v30  ;;  %v947_v6 = vsel %vm946_vm10, %v945_v58, %v2617_v38  ;;  %1252 = vrot.lane.b32.xlu0 %v1250_v43, %s2056_s15 }
 0x139   : > { %v2890_v11 = vsel %vm967_vm11, %v966_v48, %v2599_v51  ;;  %v2892_v39 = vadd.f32 %v662_v17, %v660_v14  ;;  %v3674_v23 = vstv %s3666_s0  ;;  %v3676_v25 = vstv %s3667_s14  ;;  %s3684_s0 = sld [smem:[#allocation70_spill]]  ;;  %s3687_s14 = sld [smem:[#allocation64_spill]] }
 0x13a   : > { %v681_v56 = vmul.f32 %v3674_v23, %v2649_v42  ;;  %v1221_v19 = vmul.f32 %v3676_v25, %v2647_v54  ;;  %v942_v28 = vadd.f32 %v941_v49, %v939_v12  ;;  %v1201_v38 = vadd.f32 %v1200_v33, %v1198_v10  ;;  %1189 = vrot.lane.b32.xlu1 %v1187_v13, %s2054_s6  ;;  %v2958_v25 = vpop.permute.xlu0 %762 }
 0x13b   : > { %v3679_v51 = vstv %s3671_s1  ;;  %v1390_v48 = vmul.f32 %v2790_v1, %v1383_v31  ;;  %v3681_v34 = vstv %s3672_s27  ;;  %v3683_v53 = vstv %s3673_s25  ;;  %s3689_s1 = sld [smem:[#allocation90_spill]]  ;;  %s3691_s27 = sld [smem:[#allocation69_spill]] }
 0x13c   : > { %v683_v58 = vmul.f32 %v3679_v51, %v2647_v54  ;;  %v1261_v20 = vmul.f32 %v3681_v34, %v2649_v42  ;;  %v1263_v46 = vmul.f32 %v3683_v53, %v2647_v54  ;;  %v1267_v52 = vrot.slane %v1266_v32, 7  ;;  %s3693_s25 = sld [smem:[#allocation66_spill]]  ;;  %v602_v51 = vpop.permute.xlu1 %601 }
 0x13d   : > { %v1222_v49 = vadd.f32 %v1221_v19, %v1219_v3  ;;  %v928_v36 = vmul.f32 %v2725_v62, %v921_v0  ;;  %v3685_v16 = vstv %s3675_s23  ;;  %v3686_v1 = vstv %s3677_s18  ;;  %1392 = vrot.lane.b32.xlu0 %v1390_v48, %s2056_s15  ;;  %s3695_s23 = sld [smem:[#allocation65_spill]]  ;;  %s3699_s18 = sld [smem:[#allocation92_spill]] }
 0x13e   : > { %v2913_v30 = vadd.f32 %v683_v58, %v681_v56  ;;  %v758_v2 = vmul.f32 %v3685_v16, %v2649_v42  ;;  %v960_v21 = vmul.f32 %v3686_v1, %v2649_v42  ;;  %v1264_v7 = vadd.f32 %v1263_v46, %v1261_v20 }
 0x13f   : > { %v1269_v50 = vsel %vm1268_vm12, %v1267_v52, %v1266_v32  ;;  %v3688_v40 = vstv %s3678_s7  ;;  %v3690_v62 = vstv %s3680_s2  ;;  %v949_v5 = vmul.f32 %v947_v6, %v942_v28  ;;  %930 = vrot.lane.b32.xlu1 %v928_v36, %s2055_s26  ;;  %s2057_s7 = smov 16   ;;  %s3705_s2 = sld [smem:[#allocation71_spill]] }
 0x140   : > { %v760_v41 = vmul.f32 %v3688_v40, %v2647_v54  ;;  %v962_v63 = vmul.f32 %v3690_v62, %v2647_v54  ;;  %v3692_v57 = vstv %s3682_s22  ;;  %v1365_v8 = vrot.slane %v2631_v26, 7  ;;  %s3722_s22 = sld [smem:[#allocation99_spill]] }
 0x141   : > { %v1359_v12 = vmul.f32 %v3692_v57, %v2649_v42  ;;  %v3694_v10 = vstv %s3684_s0  ;;  %v2937_v14 = vmul.f32 %v1269_v50, %v1264_v7  ;;  %v3696_v43 = vstv %s3602_s9  ;;  %s3702_s9 = sld [smem:[#allocation93_spill]]  ;;  %566 = vrot.lane.b32.xlu0 %v2325_v55, %s2057_s7  ;;  %s3033_s0 = sld [smem:[#allocation9 + $0x1f]] }
 0x142   : > { %v576_v61 = vmul.f32 %v3694_v10, %v2649_v42  ;;  %v2939_v31 = vadd.f32 %v760_v41, %v758_v2  ;;  %v779_v15 = vmul.f32 %v3696_v43, %v2649_v42  ;;  %v1208_v17 = vmul.f32 %v2762_v9, %v1201_v38  ;;  %s2060_s7 = smov 1  }
 0x143   : > { %v3697_v59 = vstv %s3687_s14  ;;  %v582_v27 = vrot.slane %v2660_v37, 7  ;;  %vm604_vm0 = vcmask 146432   ;;  %v3698_v3 = vstv %s3689_s1  ;;  %s3048_s14 = sld [smem:[#allocation9 + $0x50]]  ;;  %s3738_s1 = sld [smem:[#allocation100_spill]] }
 0x144   : > { %v1361_v33 = vmul.f32 %v3697_v59, %v2647_v54  ;;  %v781_v0 = vmul.f32 %v3698_v3, %v2647_v54  ;;  %v963_v13 = vadd.f32 %v962_v63, %v960_v21  ;;  %v3700_v32 = vstv %s3691_s27  ;;  %1210 = vrot.lane.b32.xlu1 %v1208_v17, %s2055_s26  ;;  %v623_v3 = vpop.permute.xlu1 %622  ;;  %s3073_s27 = sld [smem:[#allocation9 + $0xb]] }
 0x145   : > { %v995_v6 = vmul.f32 %v3700_v32, %v2649_v42  ;;  %v1001_v23 = vrot.slane %v1000_v45, 7  ;;  %v3701_v56 = vstv %s3693_s25  ;;  %v3703_v28 = vstv %s3695_s23  ;;  %s3741_s25 = sld [smem:[#allocation101_spill]]  ;;  %s3743_s23 = sld [smem:[#allocation97_spill]] }
 0x146   : > { %v578_v9 = vmul.f32 %v3701_v56, %v2647_v54  ;;  %v1362_v19 = vadd.f32 %v1361_v33, %v1359_v12  ;;  %v997_v38 = vmul.f32 %v3703_v28, %v2647_v54  ;;  %v2964_v58 = vadd.f32 %v781_v0, %v779_v15  ;;  %v3010_v33 = vpop.permute.xlu0 %1041 }
 0x147   : > { %v3704_v48 = vstv %s2521_s30  ;;  %v1367_v20 = vsel %vm1366_vm13, %v1365_v8, %v2631_v26  ;;  %v3706_v46 = vstv %s3699_s18  ;;  %v3707_v36 = vstv %s2529_s19  ;;  %s3711_s30 = sld [smem:[#allocation68_spill]]  ;;  %s2058_s19 = smov 64  }
 0x148   : > { %v800_v34 = vmul.f32 %v3704_v48, %v2649_v42  ;;  %v579_v53 = vadd.f32 %v578_v9, %v576_v61  ;;  %v802_v52 = vmul.f32 %v3706_v46, %v2647_v54  ;;  %v1079_v16 = vmul.f32 %v3707_v36, %v2649_v42  ;;  %985 = vrot.lane.b32.xlu0 %v2325_v55, %s2058_s19  ;;  %s3117_s18 = sld [smem:[#allocation9 + $0x20]] }
 0x149   : > { %v584_v2 = vsel %vm583_vm14, %v582_v27, %v2660_v37  ;;  %v3708_v1 = vstv %s2513_s20  ;;  %v3709_v7 = vstv %s2536_s21  ;;  %v3710_v40 = vstv %s3702_s9  ;;  %s3714_s21 = sld [smem:[#allocation95_spill]]  ;;  %s2059_s20 = smov 123  }
 0x14a   : > { %v1081_v21 = vmul.f32 %v3708_v1, %v2647_v54  ;;  %v821_v50 = vmul.f32 %v3709_v7, %v2649_v42  ;;  %v823_v26 = vmul.f32 %v3710_v40, %v2647_v54  ;;  %v998_v41 = vadd.f32 %v997_v38, %v995_v6  ;;  %951 = vrot.lane.b32.xlu1 %v949_v5, %s2059_s20  ;;  %s3133_s9 = sld [smem:[#allocation9 + $0x51]] }
 0x14b   : > { %v1003_v62 = vsel %vm1002_vm15, %v1001_v23, %v1000_v45  ;;  %vm1023_vm1 = vcmask 539648   ;;  %v2992_v37 = vadd.f32 %v802_v52, %v800_v34  ;;  %v3712_v63 = vstv %s2538_s5  ;;  %s3716_s5 = sld [smem:[#allocation76_spill]] }
 0x14c   : > { %v1100_v57 = vmul.f32 %v3712_v63, %v2649_v42  ;;  %v3713_v12 = vstv %s3705_s2  ;;  %v3001_v45 = vadd.f32 %v1081_v21, %v1079_v16  ;;  %v3003_v10 = vadd.f32 %v823_v26, %v821_v50  ;;  %v3062_v63 = vpop.permute.xlu0 %783  ;;  %s2061_s2 = smov 32  }
 0x14d   : > { %v597_v8 = vmul.f32 %v3713_v12, %v2649_v42  ;;  %v3715_v61 = vstv %s3607_s28  ;;  %v970_v43 = vmul.f32 %v2890_v11, %v963_v13  ;;  %v1229_v15 = vmul.f32 %v2766_v22, %v1222_v49  ;;  %s3720_s28 = sld [smem:[#allocation79_spill]] }
 0x14e   : > { %v1102_v55 = vmul.f32 %v3715_v61, %v2647_v54  ;;  %v586_v17 = vmul.f32 %v584_v2, %v579_v53  ;;  %v603_v59 = vrot.slane %v602_v51, 7  ;;  %v3717_v5 = vstv %s3711_s30  ;;  %s2062_s30 = smov 2  }
 0x14f   : > { %v599_v27 = vmul.f32 %v3717_v5, %v2647_v54  ;;  %v3718_v32 = vstv %s3610_s12  ;;  %v3719_v23 = vstv %s3714_s21  ;;  %v1369_v22 = vmul.f32 %v1367_v20, %v1362_v19  ;;  %s3724_s12 = sld [smem:[#allocation85_spill]]  ;;  %1231 = vrot.lane.b32.xlu1 %v1229_v15, %s2059_s20  ;;  %s2063_s21 = smov 3  }
 0x150   : > { %v3015_v0 = vadd.f32 %v1102_v55, %v1100_v57  ;;  %v561_v6 = vmul.f32 %v3718_v32, %v2649_v42  ;;  %v563_v11 = vmul.f32 %v3719_v23, %v2647_v54  ;;  %v1005_v49 = vmul.f32 %v1003_v62, %v998_v41  ;;  %588 = vrot.lane.b32.xlu0 %v586_v17, %s3635_s3 }
 0x151   : > { %vm625_vm2 = vcmask 154624   ;;  %v3721_v13 = vstv %s2567_s4  ;;  %v3723_v9 = vstv %s3611_s13  ;;  %v600_v38 = vadd.f32 %v599_v27, %v597_v8  ;;  %s3728_s13 = sld [smem:[#allocation91_spill]] }
 0x152   : > { %v981_v56 = vmul.f32 %v3721_v13, %v2649_v42  ;;  %v983_v28 = vmul.f32 %v3723_v9, %v2647_v54  ;;  %v3725_v48 = vstv %s3716_s5  ;;  %v3036_v19 = vadd.f32 %v563_v11, %v561_v6  ;;  %s3729_s4 = sld [smem:[#allocation83_spill]]  ;;  %s2064_s5 = smov 4  }
 0x153   : > { %v618_v34 = vmul.f32 %v3725_v48, %v2649_v42  ;;  %v3726_v20 = vstv %s3613_s29  ;;  %v605_v46 = vsel %vm604_vm0, %v603_v59, %v602_v51  ;;  %v624_v52 = vrot.slane %v623_v3, 7  ;;  %s3732_s29 = sld [smem:[#allocation80_spill]]  ;;  %972 = vrot.lane.b32.xlu1 %v970_v43, %s2056_s15 }
 0x154   : > { %v423_v53 = vmul.f32 %v3726_v20, %v2649_v42  ;;  %v3042_v36 = vadd.f32 %v983_v28, %v981_v56  ;;  %v3727_v16 = vstv %s3614_s10  ;;  %v1022_v1 = vrot.slane %v2836_v35, 7  ;;  %s3735_s10 = sld [smem:[#allocation94_spill]]  ;;  %1007 = vrot.lane.b32.xlu0 %v1005_v49, %s3635_s3 }
 0x155   : > { %v425_v2 = vmul.f32 %v3727_v16, %v2647_v54  ;;  %v3730_v21 = vstv %s3720_s28  ;;  %v3731_v50 = vstv %s3722_s22  ;;  %v3733_v40 = vstv %s2590_s24  ;;  %s3739_s24 = sld [smem:[#allocation96_spill]]  ;;  %s2065_s28 = smov 5  }
 0x156   : > { %v702_v7 = vmul.f32 %v3730_v21, %v2649_v42  ;;  %v704_v51 = vmul.f32 %v3731_v50, %v2647_v54  ;;  %v446_v26 = vmul.f32 %v3733_v40, %v2649_v42  ;;  %v3734_v41 = vstv %s3724_s12  ;;  %s2066_s22 = smov 6   ;;  %s2067_s12 = smov 112  }
 0x157   : > { %v1016_v62 = vmul.f32 %v3734_v41, %v2649_v42  ;;  %v3065_v57 = vadd.f32 %v425_v2, %v423_v53  ;;  %v3736_v12 = vstv %s2574_s16  ;;  %v3737_v61 = vstv %s2605_s11  ;;  %s3747_s16 = sld [smem:[#allocation102_spill]]  ;;  %s3095_s11 = sld [smem:[#allocation9 + $0x3c]]  ;;  %1371 = vrot.lane.b32.xlu1 %v1369_v22, %s2059_s20 }
 0x158   : > { %v448_v8 = vmul.f32 %v3736_v12, %v2647_v54  ;;  %v469_v55 = vmul.f32 %v3737_v61, %v2649_v42  ;;  %v3076_v15 = vadd.f32 %v704_v51, %v702_v7  ;;  %v3740_v17 = vstv %s2576_s8  ;;  %s3748_s8 = sld [smem:[#allocation73_spill]]  ;;  %v1063_v12 = vpop.permute.xlu0 %1062 }
 0x159   : > { %v471_v59 = vmul.f32 %v3740_v17, %v2647_v54  ;;  %v3742_v5 = vstv %s3728_s13  ;;  %v3744_v32 = vstv %s3729_s4  ;;  %v607_v23 = vmul.f32 %v605_v46, %v600_v38 }
 0x15a   : > { %v492_v27 = vmul.f32 %v3742_v5, %v2649_v42  ;;  %v494_v6 = vmul.f32 %v3744_v32, %v2647_v54  ;;  %v3745_v11 = vstv %s3732_s29  ;;  %v3090_v43 = vadd.f32 %v448_v8, %v446_v26  ;;  %v644_v5 = vpop.permute.xlu1 %643 }
 0x15b   : > { %v1018_v49 = vmul.f32 %v3745_v11, %v2647_v54  ;;  %v3746_v13 = vstv %s3735_s10  ;;  %v1024_v9 = vsel %vm1023_vm1, %v1022_v1, %v2836_v35  ;;  %v3099_v28 = vadd.f32 %v471_v59, %v469_v55  ;;  %609 = vrot.lane.b32.xlu0 %v607_v23, %s2053_s17 }
 0x15c   : > { %v515_v56 = vmul.f32 %v3746_v13, %v2649_v42  ;;  %v3101_v48 = vadd.f32 %v494_v6, %v492_v27  ;;  %v3749_v38 = vstv %s3738_s1  ;;  %v3750_v46 = vstv %s3739_s24  ;;  %v1834_v6 = vld [vmem:[#allocation10 + $0x2] sm:$0x3]  ;;  %s2068_s24 = smov [#allocation12]  }
 0x15d   : > { %v517_v20 = vmul.f32 %v3749_v38, %v2647_v54  ;;  %v1019_v53 = vadd.f32 %v1018_v49, %v1016_v62  ;;  %v538_v16 = vmul.f32 %v3750_v46, %v2649_v42  ;;  %v3751_v2 = vstv %s3741_s25  ;;  %428 = vrot.lane.b32.xlu1 %v1834_v6, %s2060_s7  ;;  %v3148_v38 = vld [vmem:[#allocation10] sm:$0x3]  ;;  %v1839_v6 = vld [vmem:[#allocation10 + $0xa] sm:$0x3]  ;;  %s1918_s25 = sshll.u32 %s2068_s24, 4  ;;  %s1919_s25 = int_to_ptr.vmem [resolvable:$false] %s1918_s25 }
 0x15e   : > { %v540_v21 = vmul.f32 %v3751_v2, %v2647_v54  ;;  %v3752_v7 = vstv %s3743_s23  ;;  %v1036_v1 = vstv %s3033_s0  ;;  %v3753_v51 = vstv %s3747_s16  ;;  %s3755_s0 = smov 96   ;;  %s1920_s23 = scalar_lea.vmem %s1919_s25, 64 }
 0x15f   : > { %v415_v35 = vmul.f32 %v3752_v7, %v2649_v42  ;;  %v3120_v50 = vadd.f32 %v517_v20, %v515_v56  ;;  %v417_v40 = vmul.f32 %v3753_v51, %v2647_v54  ;;  %v3754_v26 = vstv %s3748_s8  ;;  %v3144_v56 = vpop.permute.xlu0 %804 }
 0x160   : > { %v620_v41 = vmul.f32 %v3754_v26, %v2647_v54  ;;  %v1026_v62 = vmul.f32 %v1024_v9, %v1019_v53  ;;  %v3128_v8 = vadd.f32 %v540_v21, %v538_v16  ;;  %v626_v61 = vsel %vm625_vm2, %v624_v52, %v623_v3  ;;  %v665_v21 = vpop.permute.xlu1 %664 }
 0x161   : > { %v1038_v55 = vstv %s3048_s14  ;;  %v1043_v17 = vrot.slane %v3010_v33, 7  ;;  %v3135_v22 = vadd.f32 %v417_v40, %v415_v35  ;;  %v1037_v27 = vmul.f32 %v1036_v1, %v2649_v42  ;;  %706 = vrot.lane.b32.xlu1 %v3148_v38, %s2061_s2  ;;  %v1836_v35 = vld [vmem:[#allocation10 + $0x4] sm:$0x3]  ;;  %s3759_s14 = sld [smem:[#allocation106_spill]] }
 0x162   : > { %v621_v59 = vadd.f32 %v620_v41, %v618_v34  ;;  %vm1044_vm3 = vcmask 547840   ;;  %1028 = vrot.lane.b32.xlu0 %v1026_v62, %s2053_s17  ;;  %v638_v32 = vstv %s3073_s27  ;;  %v1039_v52 = vmul.f32 %v1038_v55, %v2647_v54 }
 0x163   : > { %v640_v23 = vstv %s3095_s11  ;;  %v645_v11 = vrot.slane %v644_v5, 7  ;;  %v1045_v49 = vsel %vm1044_vm3, %v1043_v17, %v3010_v33  ;;  %vm646_vm4 = vcmask 162816   ;;  %v1084_v40 = vpop.permute.xlu0 %1083 }
 0x164   : > { %v628_v3 = vmul.f32 %v626_v61, %v621_v59  ;;  %v639_v34 = vmul.f32 %v638_v32, %v2649_v42  ;;  %v1040_v13 = vadd.f32 %v1039_v52, %v1037_v27  ;;  %v1057_v9 = vstv %s3117_s18  ;;  %v1837_v61 = vld [vmem:[#allocation10 + $0x6] sm:$0x3] }
 0x165   : > { %v641_v20 = vmul.f32 %v640_v23, %v2647_v54  ;;  %v647_v46 = vsel %vm646_vm4, %v645_v11, %v644_v5  ;;  %v1059_v16 = vstv %s3133_s9  ;;  %v1064_v33 = vrot.slane %v1063_v12, 7  ;;  %451 = vrot.lane.b32.xlu1 %v1836_v35, %s2062_s30  ;;  %v1838_v5 = vld [vmem:[#allocation10 + $0x8] sm:$0x3] }
 0x166   : > { %630 = vrot.lane.b32.xlu0 %v628_v3, %s2054_s6  ;;  %v1047_v53 = vmul.f32 %v1045_v49, %v1040_v13  ;;  %v1058_v7 = vmul.f32 %v1057_v9, %v2649_v42  ;;  %vm1065_vm5 = vcmask 556032   ;;  %v1060_v51 = vmul.f32 %v1059_v16, %v2647_v54 }
 0x167   : > { %v642_v2 = vadd.f32 %v641_v20, %v639_v34  ;;  %v666_v26 = vrot.slane %v665_v21, 7  ;;  %v1066_v41 = vsel %vm1065_vm5, %v1064_v33, %v1063_v12  ;;  %vm667_vm7 = vcmask 171008   ;;  %v826_v59 = vpop.permute.xlu0 %825  ;;  %s3760_s29 = smov %s3759_s14 }
 0x168   : > { %v1061_v62 = vadd.f32 %v1060_v51, %v1058_v7  ;;  %v1085_v17 = vrot.slane %v1084_v40, 7  ;;  %vm1086_vm8 = vcmask 564224   ;;  %v827_v27 = vrot.slane %v826_v59, 7 }
 0x169   : > { %v649_v1 = vmul.f32 %v647_v46, %v642_v2  ;;  %474 = vrot.lane.b32.xlu1 %v1837_v61, %s2063_s21  ;;  %v668_v55 = vsel %vm667_vm7, %v666_v26, %v665_v21  ;;  %v722_v32 = vrot.slane %v2864_v29, 7  ;;  %vm828_vm9 = vcmask 310272  }
 0x16a   : > { %1049 = vrot.lane.b32.xlu0 %v1047_v53, %s2054_s6  ;;  %v1068_v42 = vmul.f32 %v1066_v41, %v1061_v62  ;;  %v670_v54 = vmul.f32 %v668_v55, %v2892_v39  ;;  %v1087_v12 = vsel %vm1086_vm8, %v1085_v17, %v1084_v40  ;;  %vm723_vm10 = vcmask 269312   ;;  %v1840_v39 = vld [vmem:[#allocation10 + $0xc] sm:$0x3]  ;;  %v686_v53 = vpop.permute.xlu1 %685 }
 0x16b   : > { %v1089_v3 = vmul.f32 %v1087_v12, %v3001_v45  ;;  %v829_v52 = vsel %vm828_vm9, %v827_v27, %v826_v59  ;;  %v724_v23 = vsel %vm723_vm10, %v722_v32, %v2864_v29  ;;  %v743_v11 = vrot.slane %v2781_v60, 7  ;;  %v1105_v16 = vpop.permute.xlu0 %1104 }
 0x16c   : > { %vm744_vm11 = vcmask 277504   ;;  %v831_v49 = vmul.f32 %v829_v52, %v3003_v10  ;;  %v726_v34 = vmul.f32 %v724_v23, %v2775_v44  ;;  %v764_v9 = vrot.slane %v2958_v25, 7 }
 0x16d   : > { %497 = vrot.lane.b32.xlu1 %v1838_v5, %s2064_s5  ;;  %v745_v13 = vsel %vm744_vm11, %v743_v11, %v2781_v60  ;;  %vm765_vm13 = vcmask 285696   ;;  %v785_v20 = vrot.slane %v3062_v63, 7  ;;  %vm786_vm14 = vcmask 293888  }
 0x16e   : > { %651 = vrot.lane.b32.xlu0 %v649_v1, %s2055_s26  ;;  %v747_v29 = vmul.f32 %v745_v13, %v2872_v18  ;;  %v766_v45 = vsel %vm765_vm13, %v764_v9, %v2958_v25  ;;  %v806_v10 = vrot.slane %v3144_v56, 7  ;;  %vm807_vm15 = vcmask 302080  }
 0x16f   : > { %v768_v44 = vmul.f32 %v766_v45, %v2939_v31  ;;  %v787_v60 = vsel %vm786_vm14, %v785_v20, %v3062_v63  ;;  %v687_v18 = vrot.slane %v686_v53, 7  ;;  %vm688_vm0 = vcmask 179200  }
 0x170   : > { %v789_v46 = vmul.f32 %v787_v60, %v2964_v58  ;;  %v808_v25 = vsel %vm807_vm15, %v806_v10, %v3144_v56  ;;  %v1106_v2 = vrot.slane %v1105_v16, 7  ;;  %vm1107_vm1 = vcmask 572416  }
 0x171   : > { %520 = vrot.lane.b32.xlu1 %v1839_v6, %s2065_s28  ;;  %v810_v33 = vmul.f32 %v808_v25, %v2992_v37  ;;  %v689_v31 = vsel %vm688_vm0, %v687_v18, %v686_v53  ;;  %vm439_vm2 = vcmask 1039360   ;;  %vm462_vm3 = vcmask 1031168  }
 0x172   : > { %1070 = vrot.lane.b32.xlu0 %v1068_v42, %s2055_s26  ;;  %v691_v63 = vmul.f32 %v689_v31, %v2913_v30  ;;  %v1108_v21 = vsel %vm1107_vm1, %v1106_v2, %v1105_v16  ;;  %vm988_vm4 = vcmask 523264   ;;  %vm485_vm5 = vcmask 1022976  }
 0x173   : > { %v1110_v58 = vmul.f32 %v1108_v21, %v3015_v0  ;;  %vm508_vm7 = vcmask 1014784   ;;  %vm531_vm8 = vcmask 1006592   ;;  %vm554_vm9 = vcmask 998400  }
 0x174   : > { %vm431_vm10 = vcmask 7168   ;;  %vm709_vm11 = vcmask 261120   ;;  %vm454_vm13 = vcmask 15360   ;;  %vm477_vm14 = vcmask 23552  }
 0x175   : > { %543 = vrot.lane.b32.xlu1 %v1840_v39, %s2066_s22  ;;  %vm500_vm15 = vcmask 31744   ;;  %vm523_vm0 = vcmask 39936   ;;  %vm546_vm1 = vcmask 48128  }
 0x176   : > { %672 = vrot.lane.b32.xlu0 %v670_v54, %s2059_s20 }
 0x179   : > { %728 = vrot.lane.b32.xlu1 %v726_v34, %s3635_s3 }
 0x17a   : > { %1091 = vrot.lane.b32.xlu0 %v1089_v3, %s2059_s20 }
 0x17d   : > { %749 = vrot.lane.b32.xlu1 %v747_v29, %s2053_s17 }
 0x17e   : > { %833 = vrot.lane.b32.xlu0 %v831_v49, %s2056_s15 }
 0x181   : > { %770 = vrot.lane.b32.xlu1 %v768_v44, %s2054_s6 }
 0x185   : > { %791 = vrot.lane.b32.xlu1 %v789_v46, %s2055_s26 }
 0x189   : > { %812 = vrot.lane.b32.xlu1 %v810_v33, %s2059_s20 }
 0x18d   : > { %693 = vrot.lane.b32.xlu1 %v691_v63, %s2056_s15 }
 0x191   : > { %1112 = vrot.lane.b32.xlu1 %v1110_v58, %s2056_s15 }
 0x196   : > { %v869_v56 = vpop.permute.xlu1 %868 }
 0x197   : > { %v1288_v7 = vpop.permute.xlu0 %1287  ;;  %v870_v0 = vrot.slane %v869_v56, 1 }
 0x198   : > { %v1289_v11 = vrot.slane %v1288_v7, 1 }
 0x199   : > { %v871_v32 = vsel %vm439_vm2, %v869_v56, %v870_v0 }
 0x19a   : > { %v1148_v35 = vpop.permute.xlu1 %1147  ;;  %v873_v45 = vadd.f32 %v871_v32, %v2839_v4  ;;  %v1290_v25 = vsel %vm439_vm2, %v1288_v7, %v1289_v11 }
 0x19b   : > { %v1309_v1 = vpop.permute.xlu0 %1308  ;;  %v1149_v55 = vrot.slane %v1148_v35, 1 }
 0x19c   : > { %v1310_v20 = vrot.slane %v1309_v1, 1 }
 0x19d   : > { %v1150_v54 = vsel %vm439_vm2, %v1148_v35, %v1149_v55 }
 0x19e   : > { %v890_v51 = vpop.permute.xlu1 %889  ;;  %v1152_v39 = vadd.f32 %v1150_v54, %v2866_v24 }
 0x19f   : > { %v3188_v37 = vpop.permute.xlu0 %1329  ;;  %v891_v12 = vrot.slane %v890_v51, 1 }
 0x1a0   : > { %v1331_v4 = vrot.slane %v3188_v37, 1 }
 0x1a1   : > { %v892_v13 = vsel %vm462_vm3, %v890_v51, %v891_v12 }
 0x1a2   : > { %v1169_v40 = vpop.permute.xlu1 %1168  ;;  %v894_v16 = vadd.f32 %v892_v13, %v873_v45 }
 0x1a3   : > { %v1170_v17 = vrot.slane %v1169_v40, 1 }
 0x1a4   : > { %v3190_v26 = vpop.permute.xlu0 %1350 }
 0x1a5   : > { %v1171_v6 = vsel %vm462_vm3, %v1169_v40, %v1170_v17  ;;  %v1352_v35 = vrot.slane %v3190_v26, 1 }
 0x1a6   : > { %v910_v41 = vpop.permute.xlu1 %909  ;;  %v1173_v44 = vadd.f32 %v1171_v6, %v1152_v39 }
 0x1a7   : > { %v911_v3 = vrot.slane %v910_v41, 1  ;;  %v1353_v6 = vsel %vm508_vm7, %v3190_v26, %v1352_v35 }
 0x1a9   : > { %v912_v10 = vsel %vm485_vm5, %v910_v41, %v911_v3  ;;  %v1292_v41 = vadd.f32 %v1290_v25, %v2937_v14 }
 0x1aa   : > { %v1253_v62 = vpop.permute.xlu0 %1252  ;;  %v914_v58 = vadd.f32 %v912_v10, %v894_v16 }
 0x1ab   : > { %v1254_v2 = vrot.slane %v1253_v62, 1 }
 0x1ac   : > { %v1190_v30 = vpop.permute.xlu1 %1189 }
 0x1ad   : > { %v1191_v27 = vrot.slane %v1190_v30, 1 }
 0x1af   : > { %v3192_v61 = vpop.permute.xlu0 %1392  ;;  %v1192_v9 = vsel %vm485_vm5, %v1190_v30, %v1191_v27 }
 0x1b0   : > { %v1194_v33 = vadd.f32 %v1192_v9, %v1173_v44 }
 0x1b1   : > { %v931_v42 = vpop.permute.xlu1 %930 }
 0x1b2   : > { %v932_v29 = vrot.slane %v931_v42, 1 }
 0x1b3   : > { %v3194_v59 = vpop.permute.xlu0 %566 }
 0x1b4   : > { %v933_v63 = vsel %vm508_vm7, %v931_v42, %v932_v29  ;;  %v1332_v42 = vsel %vm485_vm5, %v3188_v37, %v1331_v4  ;;  %v1394_v37 = vrot.slane %v3192_v61, 1 }
 0x1b5   : > { %v935_v30 = vadd.f32 %v933_v63, %v914_v58 }
 0x1b6   : > { %v1211_v5 = vpop.permute.xlu1 %1210  ;;  %v1395_v45 = vsel %vm554_vm9, %v3192_v61, %v1394_v37 }
 0x1b7   : > { %v1212_v52 = vrot.slane %v1211_v5, 1 }
 0x1b9   : > { %v1213_v53 = vsel %vm508_vm7, %v1211_v5, %v1212_v52  ;;  %v1255_v5 = vsel %vm554_vm9, %v1253_v62, %v1254_v2 }
 0x1ba   : > { %v986_v23 = vpop.permute.xlu0 %985  ;;  %v1215_v56 = vadd.f32 %v1213_v53, %v1194_v33 }
 0x1bb   : > { %v987_v49 = vrot.slane %v986_v23, 7 }
 0x1bc   : > { %v952_v34 = vpop.permute.xlu1 %951 }
 0x1bd   : > { %v989_v60 = vsel %vm988_vm4, %v987_v49, %v986_v23  ;;  %v953_v46 = vrot.slane %v952_v34, 1 }
 0x1be   : > { %v991_v24 = vmul.f32 %v989_v60, %v3042_v36  ;;  %v1311_v36 = vsel %vm462_vm3, %v1309_v1, %v1310_v20 }
 0x1bf   : > { %v954_v51 = vsel %vm531_vm8, %v952_v34, %v953_v46  ;;  %v1313_v1 = vadd.f32 %v1311_v36, %v1292_v41 }
 0x1c0   : > { %v956_v12 = vadd.f32 %v954_v51, %v935_v30 }
 0x1c1   : > { %v1232_v31 = vpop.permute.xlu1 %1231  ;;  %v1334_v23 = vadd.f32 %v1332_v42, %v1313_v1 }
 0x1c2   : > { %v3207_v18 = vpop.permute.xlu0 %588  ;;  %v1233_v21 = vrot.slane %v1232_v31, 1 }
 0x1c3   : > { %v1355_v49 = vadd.f32 %v1353_v6, %v1334_v23 }
 0x1c4   : > { %v1234_v7 = vsel %vm531_vm8, %v1232_v31, %v1233_v21 }
 0x1c5   : > { %v1236_v55 = vadd.f32 %v1234_v7, %v1215_v56  ;;  %v973_v17 = vpop.permute.xlu1 %972 }
 0x1c6   : > { %v1008_v40 = vpop.permute.xlu0 %1007  ;;  %v974_v54 = vrot.slane %v973_v17, 1 }
 0x1c7   : > { %v1009_v0 = vrot.slane %v1008_v40, 1  ;;  %v1257_v32 = vadd.f32 %v1255_v5, %v1236_v55 }
 0x1c8   : > { %v975_v14 = vsel %vm554_vm9, %v973_v17, %v974_v54 }
 0x1c9   : > { %v1010_v27 = vsel %vm439_vm2, %v1008_v40, %v1009_v0  ;;  %v977_v11 = vadd.f32 %v975_v14, %v956_v12  ;;  %v1372_v39 = vpop.permute.xlu1 %1371  ;;  %1414 = vrot.lane.b32.xlu1 %v1257_v32, %s2067_s12 }
 0x1ca   : > { %v1012_v3 = vadd.f32 %v1010_v27, %v991_v24  ;;  %v1373_v62 = vrot.slane %v1372_v39, 1 }
 0x1cb   : > { %1407 = vrot.lane.b32.xlu0 %v977_v11, %s2067_s12 }
 0x1cc   : > { %v1374_v34 = vsel %vm531_vm8, %v1372_v39, %v1373_v62  ;;  %v568_v39 = vrot.slane %v3194_v59, 7 }
 0x1cd   : > { %v3224_v52 = vpop.permute.xlu0 %609  ;;  %v1376_v13 = vadd.f32 %v1374_v34, %v1355_v49 }
 0x1cf   : > { %v429_v29 = vpop.permute.xlu1 %428  ;;  %v1397_v60 = vadd.f32 %v1395_v45, %v1376_v13 }
 0x1d0   : > { %v430_v20 = vrot.slane %v429_v29, 7 }
 0x1d1   : > { %1428 = vrot.lane.b32.xlu0 %v1397_v60, %s3755_s0 }
 0x1d2   : > { %v432_v53 = vsel %vm431_vm10, %v430_v20, %v429_v29  ;;  %vm569_vm10 = vcmask 130048  }
 0x1d3   : > { %v434_v46 = vmul.f32 %v432_v53, %v3065_v57  ;;  %v707_v25 = vpop.permute.xlu1 %706 }
 0x1d4   : > { %v1029_v26 = vpop.permute.xlu0 %1028  ;;  %v708_v16 = vrot.slane %v707_v25, 7 }
 0x1d5   : > { %v1030_v9 = vrot.slane %v1029_v26, 1  ;;  %436 = vrot.lane.b32.xlu1 %v434_v46, %s3635_s3  ;;  %s3756_s3 = sld [smem:[#allocation27_spill]] }
 0x1d6   : > { %v710_v33 = vsel %vm709_vm11, %v708_v16, %v707_v25  ;;  %vm1402_vm11 = vcmask 916480  }
 0x1d7   : > { %v1031_v44 = vsel %vm462_vm3, %v1029_v26, %v1030_v9  ;;  %v712_v61 = vmul.f32 %v710_v33, %v3076_v15  ;;  %v452_v2 = vpop.permute.xlu1 %451  ;;  %v611_v26 = vrot.slane %v3224_v52, 1 }
 0x1d8   : > { %v1033_v10 = vadd.f32 %v1031_v44, %v1012_v3  ;;  %v3233_v24 = vpop.permute.xlu0 %630  ;;  %v453_v63 = vrot.slane %v452_v2, 7 }
 0x1d9   : > { %v632_v29 = vrot.slane %v3233_v24, 1  ;;  %v612_v53 = vsel %vm462_vm3, %v3224_v52, %v611_v26 }
 0x1da   : > { %v455_v56 = vsel %vm454_vm13, %v453_v63, %v452_v2 }
 0x1db   : > { %v457_v36 = vmul.f32 %v455_v56, %v3090_v43  ;;  %v475_v35 = vpop.permute.xlu1 %474  ;;  %v633_v16 = vsel %vm485_vm5, %v3233_v24, %v632_v29  ;;  %s1451_s1 = scalar_lea.sflag [#allocation7], %s3756_s3 }
 0x1dc   : > { %v1050_v31 = vpop.permute.xlu0 %1049  ;;  %v476_v51 = vrot.slane %v475_v35, 7 }
 0x1dd   : > { %v1051_v4 = vrot.slane %v1050_v31, 1  ;;  %459 = vrot.lane.b32.xlu0 %v457_v36, %s2053_s17  ;;  %s3757_s17 = sld [smem:[#allocation20_spill]] }
 0x1de   : > { %v478_v7 = vsel %vm477_vm14, %v476_v51, %v475_v35 }
 0x1df   : > { %v1052_v21 = vsel %vm485_vm5, %v1050_v31, %v1051_v4  ;;  %v480_v15 = vmul.f32 %v478_v7, %v3099_v28  ;;  %v498_v30 = vpop.permute.xlu1 %497 }
 0x1e0   : > { %v1054_v58 = vadd.f32 %v1052_v21, %v1033_v10  ;;  %v3240_v57 = vpop.permute.xlu0 %651  ;;  %v499_v55 = vrot.slane %v498_v30, 7 }
 0x1e1   : > { %482 = vrot.lane.b32.xlu1 %v480_v15, %s2054_s6  ;;  %s3758_s6 = sld [smem:[#allocation25_spill]] }
 0x1e2   : > { %v501_v43 = vsel %vm500_vm15, %v499_v55, %v498_v30 }
 0x1e3   : > { %v503_v42 = vmul.f32 %v501_v43, %v3101_v48  ;;  %v521_v5 = vpop.permute.xlu1 %520 }
 0x1e4   : > { %v1071_v40 = vpop.permute.xlu0 %1070  ;;  %v522_v54 = vrot.slane %v521_v5, 7 }
 0x1e5   : > { %v1072_v41 = vrot.slane %v1071_v40, 1  ;;  %505 = vrot.lane.b32.xlu0 %v503_v42, %s2055_s26  ;;  %s1581_s26 = sshll.u32 %s3756_s3, 1 }
 0x1e6   : > { %v524_v1 = vsel %vm523_vm0, %v522_v54, %v521_v5 }
 0x1e7   : > { %v1073_v0 = vsel %vm508_vm7, %v1071_v40, %v1072_v41  ;;  %v526_v28 = vmul.f32 %v524_v1, %v3120_v50  ;;  %v544_v12 = vpop.permute.xlu1 %543  ;;  %v590_v50 = vrot.slane %v3207_v18, 1  ;;  %p3761_p2 = scmp.ne.s32.totalorder %s3758_s6, 0 }
 0x1e8   : > { %v3247_v17 = vadd.f32 %v1073_v0, %v1054_v58  ;;  %v545_v27 = vrot.slane %v544_v12, 7  ;;  %v673_v44 = vpop.permute.xlu0 %672 }
 0x1e9   : > { %528 = vrot.lane.b32.xlu1 %v526_v28, %s2059_s20  ;;  %v591_v9 = vsel %vm439_vm2, %v3207_v18, %v590_v50  ;;  %v674_v18 = vrot.slane %v673_v44, 1 }
 0x1ea   : > { %v547_v32 = vsel %vm546_vm1, %v545_v27, %v544_v12 }
 0x1eb   : > { %v549_v6 = vmul.f32 %v547_v32, %v3128_v8  ;;  %v729_v3 = vpop.permute.xlu1 %728  ;;  %v570_v8 = vsel %vm569_vm10, %v568_v39, %v3194_v59  ;;  %v653_v59 = vrot.slane %v3240_v57, 1  ;;  %v675_v52 = vsel %vm531_vm8, %v673_v44, %v674_v18 }
 0x1ec   : > { %v730_v14 = vrot.slane %v729_v3, 1  ;;  %v572_v20 = vmul.f32 %v570_v8, %v3036_v19  ;;  %v1092_v40 = vpop.permute.xlu0 %1091 }
 0x1ed   : > { %551 = vrot.lane.b32.xlu0 %v549_v6, %s2056_s15  ;;  %v654_v19 = vsel %vm508_vm7, %v3240_v57, %v653_v59  ;;  %v1093_v57 = vrot.slane %v1092_v40, 1  ;;  %s1686_s15 = sshll.u32 %s3757_s17, 5 }
 0x1ee   : > { %v731_v48 = vsel %vm439_vm2, %v729_v3, %v730_v14  ;;  %v593_v25 = vadd.f32 %v591_v9, %v572_v20  ;;  %v419_v9 = vmul.f32 %v3148_v38, %v3135_v22  ;;  %s3303_s10 = scalar_lea.hbm %s3759_s14, %s1686_s15 }
 0x1ef   : > { %v733_v23 = vadd.f32 %v731_v48, %v712_v61  ;;  %v750_v11 = vpop.permute.xlu1 %749  ;;  %v1094_v42 = vsel %vm531_vm8, %v1092_v40, %v1093_v57 }
 0x1f0   : > { %v751_v37 = vrot.slane %v750_v11, 1  ;;  %v614_v31 = vadd.f32 %v612_v53, %v593_v25  ;;  %v834_v15 = vpop.permute.xlu0 %833  ;;  %v1096_v32 = vadd.f32 %v1094_v42, %v3247_v17 }
 0x1f1   : > { %v835_v30 = vrot.slane %v834_v15, 1 }
 0x1f2   : > { %v752_v62 = vsel %vm462_vm3, %v750_v11, %v751_v37  ;;  %v635_v63 = vadd.f32 %v633_v16, %v614_v31 }
 0x1f3   : > { %v754_v49 = vadd.f32 %v752_v62, %v733_v23  ;;  %v771_v34 = vpop.permute.xlu1 %770  ;;  %v836_v5 = vsel %vm554_vm9, %v834_v15, %v835_v30 }
 0x1f4   : > { %v772_v13 = vrot.slane %v771_v34, 1  ;;  %v656_v58 = vadd.f32 %v654_v19, %v635_v63 }
 0x1f6   : > { %v773_v45 = vsel %vm485_vm5, %v771_v34, %v772_v13  ;;  %v677_v24 = vadd.f32 %v675_v52, %v656_v58 }
 0x1f7   : > { %v775_v60 = vadd.f32 %v773_v45, %v754_v49  ;;  %v792_v10 = vpop.permute.xlu1 %791 }
 0x1f8   : > { %v793_v46 = vrot.slane %v792_v10, 1 }
 0x1fa   : > { %v794_v33 = vsel %vm508_vm7, %v792_v10, %v793_v46 }
 0x1fb   : > { %v796_v61 = vadd.f32 %v794_v33, %v775_v60  ;;  %v813_v4 = vpop.permute.xlu1 %812 }
 0x1fc   : > { %v814_v2 = vrot.slane %v813_v4, 1 }
 0x1fe   : > { %v815_v21 = vsel %vm531_vm8, %v813_v4, %v814_v2 }
 0x1ff   : > { %v817_v56 = vadd.f32 %v815_v21, %v796_v61  ;;  %v694_v36 = vpop.permute.xlu1 %693 }
 0x200   : > { %v695_v35 = vrot.slane %v694_v36, 1 }
 0x201   : > { %v838_v28 = vadd.f32 %v836_v5, %v817_v56 }
 0x202   : > { %v696_v51 = vsel %vm554_vm9, %v694_v36, %v695_v35 }
 0x203   : > { %v698_v7 = vadd.f32 %v696_v51, %v677_v24  ;;  %v1113_v41 = vpop.permute.xlu1 %1112 }
 0x204   : > { %v1114_v0 = vrot.slane %v1113_v41, 1 }
 0x205   : > { %1399 = vrot.lane.b32.xlu1 %v698_v7, %s2067_s12 }
 0x206   : > { %v1115_v12 = vsel %vm554_vm9, %v1113_v41, %v1114_v0 }
 0x207   : > { %v1117_v14 = vadd.f32 %v1115_v12, %v1096_v32 }
 0x23b   : > { %v1415_v55 = vpop.permute.xlu1 %1414 }
 0x23c   : > { %v1416_v54 = vrot.slane %v1415_v55, 1 }
 0x23d   : > { %v1408_v43 = vpop.permute.xlu0 %1407 }
 0x23e   : > { %v1409_v1 = vrot.slane %v1408_v43, 1  ;;  %v1417_v3 = vsel %vm1402_vm11, %v1415_v55, %v1416_v54 }
 0x23f   : > { %v1419_v11 = vadd.f32 %v1417_v3, %v1117_v14 }
 0x240   : > { %v1410_v27 = vsel %vm1402_vm11, %v1408_v43, %v1409_v1 }
 0x241   : > { %v1412_v6 = vadd.f32 %v1410_v27, %v838_v28 }
 0x243   : > { %1421 = vrot.lane.b32.xlu0 %v1412_v6, %s3755_s0  ;;  %v1429_v48 = vpop.permute.xlu0 %1428 }
 0x244   : > { %v1430_v23 = vrot.slane %v1429_v48, 1 }
 0x246   : > { %v1431_v39 = vsel %vm1268_vm12, %v1429_v48, %v1430_v23 }
 0x247   : > { %v1433_v37 = vadd.f32 %v1431_v39, %v1419_v11  ;;  %v437_v50 = vpop.permute.xlu1 %436 }
 0x248   : > { %v438_v49 = vrot.slane %v437_v50, 1 }
 0x249   : > { %1435 = vrot.lane.b32.xlu1 %v1433_v37, %s2058_s19  ;;  %s231_s19 = scalar_lea.vmem [#allocation12], %s1581_s26 }
 0x24a   : > { %v440_v26 = vsel %vm439_vm2, %v437_v50, %v438_v49  ;;  %s1465_s20 = sshll.u32 %s231_s19, 4  ;;  %s3305_s20 = int_to_ptr.vmem [resolvable:$true] %s1465_s20 }
 0x24b   : > { %v442_v44 = vadd.f32 %v440_v26, %v419_v9  ;;  %s1914_s27 = scalar_lea.vmem %s3305_s20, 32  ;;  %p1921_p0 = scmp.lt.s32.totalorder %s3305_s20, %s1919_s25 }
 0x24c   : > { %p1915_p8 = scmp.ne.s32.totalorder %s3305_s20, %s1914_s27  ;;  %p1922_p6 = scmp.lt.s32.totalorder %s1920_s23, %s1914_s27 }
 0x24e   : > { %p1916_p10 = pnand %p1915_p8, %p3761_p2  ;;  %p1923_p3 = por %p1922_p6, %p1921_p0 }
 0x24f   : > { %v460_v62 = vpop.permute.xlu0 %459 }
 0x250   : > { %v461_v8 = vrot.slane %v460_v62, 1  ;;  %p1917_p13 = pneg %p1916_p10 }
 0x252   : > { %v463_v45 = vsel %vm462_vm3, %v460_v62, %v461_v8  ;;  %p1924_p11 = pnand %p1923_p3, %p1917_p13 }
 0x253   : > { %v483_v34 = vpop.permute.xlu1 %482  ;;  %v465_v59 = vadd.f32 %v463_v45, %v442_v44 }
 0x254   : > { %v484_v13 = vrot.slane %v483_v34, 1 }
 0x256   : > { %v486_v10 = vsel %vm485_vm5, %v483_v34, %v484_v13 }
 0x257   : > { %v506_v17 = vpop.permute.xlu0 %505  ;;  %v488_v16 = vadd.f32 %v486_v10, %v465_v59 }
 0x258   : > { %v507_v20 = vrot.slane %v506_v17, 1 }
 0x25a   : > { %v509_v46 = vsel %vm508_vm7, %v506_v17, %v507_v20 }
 0x25b   : > { %v529_v29 = vpop.permute.xlu1 %528  ;;  %v511_v33 = vadd.f32 %v509_v46, %v488_v16 }
 0x25c   : > { %v530_v53 = vrot.slane %v529_v29, 1 }
 0x25e   : > { %v532_v18 = vsel %vm531_vm8, %v529_v29, %v530_v53 }
 0x25f   : > { %v552_v60 = vpop.permute.xlu0 %551  ;;  %v534_v22 = vadd.f32 %v532_v18, %v511_v33 }
 0x260   : > { %v553_v25 = vrot.slane %v552_v60, 1 }
 0x262   : > { %v555_v31 = vsel %vm554_vm9, %v552_v60, %v553_v25 }
 0x263   : > { %v557_v4 = vadd.f32 %v555_v31, %v534_v22 }
 0x277   : > { %v1400_v38 = vpop.permute.xlu1 %1399 }
 0x278   : > { %v1401_v61 = vrot.slane %v1400_v38, 1 }
 0x27a   : > { %v1403_v19 = vsel %vm1402_vm11, %v1400_v38, %v1401_v61 }
 0x27b   : > { %v1405_v2 = vadd.f32 %v1403_v19, %v557_v4 }
 0x2b5   : > { %v1422_v63 = vpop.permute.xlu0 %1421 }
 0x2b6   : > { %v1423_v52 = vrot.slane %v1422_v63, 1 }
 0x2b8   : > { %v1424_v21 = vsel %vm1268_vm12, %v1422_v63, %v1423_v52 }
 0x2b9   : > { %v1426_v36 = vadd.f32 %v1424_v21, %v1405_v2 }
 0x2bb   : > { %v1436_v58 = vpop.permute.xlu1 %1435 }
 0x2bc   : > { %v1437_v56 = vrot.slane %v1436_v58, 1 }
 0x2be   : > { %v1438_v35 = vsel %vm988_vm4, %v1436_v58, %v1437_v56 }
 0x2bf   : > { %v1440_v24 = vadd.f32 %v1438_v35, %v1426_v36 }
 0x2c1   : > { %v1679_v51 = vmul.f32 -1.442695, %v1440_v24 }
 0x2c3   : > { %1830 = vpow2.f32 %v1679_v51 }
 0x2cd   : > { %v1831_v7 = vpop.eup %1830 }
 0x2ce   : > { %v1444_v40 = vadd.f32 1.0, %v1831_v7 }
 0x2d0   : > { %1832 = vrcp.f32 %v1444_v40 }
 0x2da   : > { %v1833_v15 = vpop.eup %1832 }
 0x2db   : > { %1449 = vst.msk [vmem:[%s231_s19] sm:$0x3] %vm2304_vm6, %v1833_v15 }
 0x2dc   : > { %1927 = shalt.err (!%p1924_p11)
}
 0x2dd   : > { %s1928_s16 = scalar_lea.hbm %s3303_s10, 32  ;;  %s1932_s18 = scalar_lea.hbm %s3760_s29, 64 }
 0x2de   : > { %p1929_p7 = scmp.ne.s32.totalorder %s3303_s10, %s1928_s16  ;;  %p1933_p4 = scmp.lt.u32.totalorder %s3303_s10, %s3760_s29 }
 0x2df   : > { %p1934_p9 = scmp.lt.u32.totalorder %s1932_s18, %s1928_s16  ;;  %p1936_p8 = scmp.lt.u32.totalorder %s1928_s16, %s3303_s10 }
 0x2e0   : > { %p1930_p12 = pnand %p1929_p7, %p3761_p2 }
 0x2e1   : > { %p1935_p5 = por %p1934_p9, %p1933_p4 }
 0x2e2   : > { %p1931_p1 = pneg %p1930_p12 }
 0x2e3   : > { %p1937_p10 = por %p1936_p8, %p1935_p5 }
 0x2e5   : > { %p1938_p13 = pnand %p1937_p10, %p1931_p1 }
 0x2e7   : > { %1941 = shalt.err (!%p1938_p13)
}
 0x2e8   : > { %1697 = dma.vmem_to_hbm [thread:$0]  (%p3761_p2), %s3305_s20, 32, %s3303_s10, %s1451_s1  }
 0x2e9 PF: > { %s3762_s2 = sld [smem:[#allocation17_spill]]  ;;  %s3763_s30 = sld [smem:[#allocation23_spill]] }
 0x2ea   : > { %s3764_s21 = sld [smem:[#allocation22_spill]] }
 0x2ef   : > { %s1477_s5 = sand.u32 1, %s3762_s2   ;;  %p3765_p0 = scmp.ne.s32.totalorder %s3763_s30, 0 }
 0x2f0   : > { %p3766_p6 = scmp.ge.s32.totalorder %s3764_s21, 2  ;;  %s1478_s28 = scalar_lea.sflag [#allocation7], %s1477_s5 }
 0x2f2   : > { %p1711_p3 = pnand %p3766_p6, %p3765_p0 }
 0x2f4   : > { %1979 = dma.done.wait (!%p1711_p3), %s1478_s28, 32  }
 0x2f5   : > { %1981 = vsyncadd (!%p1711_p3), %s1478_s28, 4294967264  ;;  %s21_s17 = sadd.s32 1, %s3764_s21   ;;  %s3767_s12 = sld [smem:[#allocation18_spill]] }
 0x2f6   : > { %p18_p11 = scmp.ge.s32.totalorder %s21_s17, 4   ;;  %s3768_s13 = sld [smem:[#allocation19_spill]] }
 0x2f7   : > { %s3769_s14 = sld [smem:[#allocation26_spill]]  ;;  %s3770_s15 = sld [smem:[#allocation21_spill]] }
 0x2f8   : > { %s3771_s16 = sld [smem:[#allocation24_spill]]  ;;  %20 = sbr.rel (!%p18_p11) target bundleno = 13 (0xd), region = 105 }
 0x2ff   :  { %1483 = vsyncpa [#allocation6], 1 }
 0x300   :  { %1485 = vsyncpa [#allocation6 + $0x1], 1 }
 0x301   :  { %1486 = vsyncpa [#allocation11], 1 }
 0x302   :  { %1487 = vsyncpa [#allocation7], 1 }
 0x303   :  { %1489 = vsyncpa [#allocation7 + $0x1], 1 }
 0x304   :  { %1490 = vsyncpa [#allocation8], 1 }
 0x305   :  { %1492 = vsyncpa [#allocation8 + $0x1], 1 }

</bundles_post_ra>
